<compile_context>
chip_gen: v5e
topology: v5e:2x2
jax: 0.10.0
libtpu: 0.0.40
codegen_flags: <defaults>
</compile_context>

<pallas_src>
import functools

import jax
import jax.numpy as jnp
import numpy as np
from jax.experimental import pallas as pl
from jax.experimental.pallas import tpu as pltpu

EPS = 1e-5


def _bottle2neck_kernel(x_ref, w1_ref, b1_ref, g1_ref, be1_ref,
                        convw_ref, convb_ref, bg_ref, bb_ref,
                        w3_ref, b3_ref, g3_ref, be3_ref,
                        se1_ref, se2_ref, out_ref,
                        cat_ref,
                        *, width, nums, ksize, dilation, pad):
    B, Wlen, C = out_ref.shape
    M = B * Wlen
    f32 = jnp.float32
    bf16 = jnp.bfloat16
    inv_m = 1.0 / M

    def mm(a, b):
        # bf16 MXU operands, f32 accumulation.
        return jnp.dot(a, b, preferred_element_type=f32)

    def bn(y, gamma, beta):
        # Single-pass train-mode BatchNorm1d over the fused B*W rows (biased variance).
        s1 = jnp.sum(y, axis=0, keepdims=True)
        s2 = jnp.sum(y * y, axis=0, keepdims=True)
        mean = s1 * inv_m
        var = s2 * inv_m - mean * mean
        return (y - mean) * jax.lax.rsqrt(var + EPS) * gamma + beta

    # conv1 (1x1) -> relu -> bn1 on the batch-fused slab.
    x_bf = x_ref[...].reshape(M, C).astype(bf16)
    out1 = bn(jnp.maximum(mm(x_bf, w1_ref[...]) + b1_ref[...], 0.0),
              g1_ref[...], be1_ref[...])

    # Hoisted tap-shift edge masks: position within a batch along the fused sublane axis.
    row = jax.lax.broadcasted_iota(jnp.int32, (M, 1), 0)
    w_in = row % Wlen
    offsets = [t * dilation - pad for t in range(ksize)]
    masks = {off: jnp.logical_and(w_in + off >= 0, w_in + off < Wlen).astype(f32)
             for off in offsets if off != 0}

    # Res2Net hierarchical groups (sequential dependency between groups).
    sp = None
    for i in range(nums):
        spx_i = out1[:, i * width:(i + 1) * width]
        sp = spx_i if i == 0 else sp + spx_i
        # Single stacked-tap matmul: column block t of y holds sp @ W_tap[t].
        y = mm(sp.astype(bf16), convw_ref[i])                   # [M, ksize*width] f32
        # Value-level dilated-conv tap combine: per tap, roll along the fused B*W axis
        # (XLU slot) and zero the rows whose source index falls outside [0, W)
        # (conv zero padding; also kills the cross-batch wraparound of the roll).
        conv = None
        for t in range(ksize):
            y_t = y[:, t * width:(t + 1) * width]
            off = offsets[t]
            if off != 0:
                y_t = pltpu.roll(y_t, (-off) % M, axis=0) * masks[off]
            conv = y_t if conv is None else conv + y_t
        conv = jnp.maximum(conv + convb_ref[i:i + 1, :], 0.0)
        sp = bn(conv, bg_ref[i:i + 1, :], bb_ref[i:i + 1, :])
        cat_ref[:, i * width:(i + 1) * width] = sp.astype(bf16)
    # Last split passes through unchanged into the concatenation.
    cat_ref[:, nums * width:C] = out1[:, nums * width:C].astype(bf16)

    # conv3 (1x1): single large-K bf16 matmul over the concat -> relu -> bn3.
    out3 = bn(jnp.maximum(mm(cat_ref[...], w3_ref[...]) + b3_ref[...], 0.0),
              g3_ref[...], be3_ref[...])

    # Squeeze-Excitation (batched over B) + residual (re-read x_ref, f32 math).
    out3_3d = out3.reshape(B, Wlen, C)
    sq = jnp.mean(out3_3d, axis=1)                              # [B, C]
    h = jnp.maximum(mm(sq.astype(bf16), se1_ref[...]), 0.0)
    e = jax.nn.sigmoid(mm(h.astype(bf16), se2_ref[...]))
    out_ref[...] = (out3_3d * e[:, None, :] + x_ref[...]).astype(out_ref.dtype)


def bottle2neck(x_ncw, p, *, channels, reduction, kernel_size, dilation):
    width = channels // reduction
    nums = reduction - 1
    hidden = channels // reduction
    pad = (kernel_size // 2) * dilation
    B, C, Wlen = x_ncw.shape
    # TODO(synk): PyTorch uses floor(channels/reduction); non-divisible channel counts
    #             change conv1/bn1 widths and are not handled by this column-slab layout.
    assert channels % reduction == 0

    x_bwc = jnp.transpose(x_ncw, (0, 2, 1)).astype(jnp.float32)

    # Stack per-group tap weights into [c_in, ksize*c_out] so each group is exactly one
    # MXU matmul with a lane-dense (ksize*width) output; matmul weights go in as bf16.
    convw_stacked = jnp.transpose(p['convw'], (0, 2, 1, 3)).reshape(
        nums, width, kernel_size * width).astype(jnp.bfloat16)

    kernel = functools.partial(_bottle2neck_kernel, width=width, nums=nums,
                               ksize=kernel_size, dilation=dilation, pad=pad)
    vmem = pl.BlockSpec(memory_space=pltpu.MemorySpace.VMEM)
    args = (
        x_bwc,
        p['w1'].astype(jnp.bfloat16), p['b1'][None, :], p['g1'][None, :], p['be1'][None, :],
        convw_stacked, p['convb'], p['bg'], p['bb'],
        p['w3'].astype(jnp.bfloat16), p['b3'][None, :], p['g3'][None, :], p['be3'][None, :],
        p['se1'].astype(jnp.bfloat16), p['se2'].astype(jnp.bfloat16),
    )

    M = B * Wlen
    flops = (2 * M * C * C) * 2 \
        + nums * 2 * M * width * (kernel_size * width) \
        + 2 * (2 * B * C * hidden)
    io_bytes = sum(int(np.prod(a.shape)) * a.dtype.itemsize for a in args) + M * C * 4
    cost = pl.CostEstimate(flops=int(flops),
                           transcendentals=int(B * C + 4 * M),
                           bytes_accessed=int(io_bytes))

    # Generation-aware VMEM budget: derived from actual slab sizes, capped well below
    # v7x's 64 MiB physical VMEM so double buffers / compiler scratch still fit.
    vmem_bytes = int(min(max(4 * io_bytes, 16 * 1024 * 1024), 40 * 1024 * 1024))

    out_bwc = pl.pallas_call(
        kernel,
        out_shape=jax.ShapeDtypeStruct((B, Wlen, C), jnp.float32),
        in_specs=[vmem] * len(args),
        out_specs=vmem,
        scratch_shapes=[
            pltpu.VMEM((M, C), jnp.bfloat16),   # concat slab for the large-K conv3
        ],
        compiler_params=pltpu.CompilerParams(vmem_limit_bytes=vmem_bytes),
        cost_estimate=cost,
    )(*args)
    return jnp.transpose(out_bwc, (0, 2, 1))


def init_params(key, channels, reduction, kernel_size):
    width = channels // reduction
    nums = reduction - 1
    hidden = channels // reduction
    ks = jax.random.split(key, 14)

    def nrm(k, shape, scale=0.1):
        return scale * jax.random.normal(k, shape, jnp.float32)

    return dict(
        # 1x1 convs stored as [c_in, c_out] (== torch weight[o, c, 0].T)
        w1=nrm(ks[0], (channels, channels)),
        b1=nrm(ks[1], (channels,)),
        g1=1.0 + nrm(ks[2], (channels,)),
        be1=nrm(ks[3], (channels,)),
        # dilated convs stored as [group, tap, c_in, c_out]
        convw=nrm(ks[4], (nums, kernel_size, width, width)),
        convb=nrm(ks[5], (nums, width)),
        bg=1.0 + nrm(ks[6], (nums, width)),
        bb=nrm(ks[7], (nums, width)),
        w3=nrm(ks[8], (channels, channels)),
        b3=nrm(ks[9], (channels,)),
        g3=1.0 + nrm(ks[10], (channels,)),
        be3=nrm(ks[11], (channels,)),
        # SE linears stored pre-transposed: se1 = W_fc1.T [C, H], se2 = W_fc2.T [H, C]
        se1=nrm(ks[12], (channels, hidden)),
        se2=nrm(ks[13], (hidden, channels)),
    )


def reference_forward(x_ncw, p, *, channels, reduction, kernel_size, dilation):
    """Plain-JAX f32 reference with the same parameter layout (numerical check)."""
    width = channels // reduction
    nums = reduction - 1
    pad = (kernel_size // 2) * dilation
    B, C, Wlen = x_ncw.shape

    def bn(y, gamma, beta):
        mean = y.mean(axis=(0, 2), keepdims=True)
        var = jnp.square(y - mean).mean(axis=(0, 2), keepdims=True)
        return ((y - mean) * jax.lax.rsqrt(var + EPS) * gamma.reshape(1, -1, 1)
                + beta.reshape(1, -1, 1))

    out = jnp.einsum('co,bcw->bow', p['w1'], x_ncw) + p['b1'].reshape(1, -1, 1)
    out = bn(jax.nn.relu(out), p['g1'], p['be1'])
    spx = [out[:, i * width:(i + 1) * width, :] for i in range(reduction)]
    pieces = []
    sp = None
    for i in range(nums):
        sp = spx[i] if i == 0 else sp + spx[i]
        sp_pad = jnp.pad(sp, ((0, 0), (0, 0), (pad, pad)))
        conv = sum(jnp.einsum('co,bcw->bow', p['convw'][i, t],
                              sp_pad[:, :, t * dilation:t * dilation + Wlen])
                   for t in range(kernel_size))
        conv = conv + p['convb'][i].reshape(1, -1, 1)
        sp = bn(jax.nn.relu(conv), p['bg'][i], p['bb'][i])
        pieces.append(sp)
    pieces.append(spx[nums])
    cat = jnp.concatenate(pieces, axis=1)
    out = jnp.einsum('co,bcw->bow', p['w3'], cat) + p['b3'].reshape(1, -1, 1)
    out = bn(jax.nn.relu(out), p['g3'], p['be3'])
    sq = out.mean(axis=2)                                   # [B, C]
    e = jax.nn.sigmoid(jax.nn.relu(sq @ p['se1']) @ p['se2'])
    return out * e[:, :, None] + x_ncw


if __name__ == "__main__":
    channels, reduction, kernel_size, dilation = 64, 4, 3, 2   # width = 16, nums = 3
    B, Wlen = 2, 32

    key = jax.random.PRNGKey(0)
    kx, kp = jax.random.split(key)
    x = jax.random.normal(kx, (B, channels, Wlen), jnp.float32)   # NCW like PyTorch
    params = init_params(kp, channels, reduction, kernel_size)

    out = bottle2neck(x, params, channels=channels, reduction=reduction,
                      kernel_size=kernel_size, dilation=dilation)
    out = jax.block_until_ready(out)
    assert out.shape == x.shape and out.dtype == jnp.float32

    ref = reference_forward(x, params, channels=channels, reduction=reduction,
                            kernel_size=kernel_size, dilation=dilation)
    # Tolerance loosened vs the f32-only version: matmul operands are bf16 on the MXU.
    np.testing.assert_allclose(np.asarray(out), np.asarray(ref), rtol=3e-2, atol=3e-2)
    print("KERNEL_OK")
</pallas_src>

<mosaic_0001>
module attributes {stable_mosaic.version = 11 : i64} {
  func.func @_bottle2neck_kernel(%arg0: memref<2x32x64xf32, #tpu.memory_space<vmem>>, %arg1: memref<64x64xbf16, #tpu.memory_space<vmem>>, %arg2: memref<1x64xf32, #tpu.memory_space<vmem>>, %arg3: memref<1x64xf32, #tpu.memory_space<vmem>>, %arg4: memref<1x64xf32, #tpu.memory_space<vmem>>, %arg5: memref<3x16x48xbf16, #tpu.memory_space<vmem>>, %arg6: memref<3x16xf32, #tpu.memory_space<vmem>>, %arg7: memref<3x16xf32, #tpu.memory_space<vmem>>, %arg8: memref<3x16xf32, #tpu.memory_space<vmem>>, %arg9: memref<64x64xbf16, #tpu.memory_space<vmem>>, %arg10: memref<1x64xf32, #tpu.memory_space<vmem>>, %arg11: memref<1x64xf32, #tpu.memory_space<vmem>>, %arg12: memref<1x64xf32, #tpu.memory_space<vmem>>, %arg13: memref<64x16xbf16, #tpu.memory_space<vmem>>, %arg14: memref<16x64xbf16, #tpu.memory_space<vmem>>, %arg15: memref<2x32x64xf32, #tpu.memory_space<vmem>>, %arg16: memref<64x64xbf16, #tpu.memory_space<vmem>>) attributes {dimension_semantics = [], scalar_prefetch = 0 : i64, scratch_operands = 1 : i64, tpu.core_type = #tpu.core_type<tc>} {
    %c0 = arith.constant 0 : index
    %c0_0 = arith.constant 0 : index
    %c0_1 = arith.constant 0 : index
    %0 = vector.load %arg0[%c0, %c0_0, %c0_1] : memref<2x32x64xf32, #tpu.memory_space<vmem>>, vector<2x32x64xf32>
    %1 = vector.shape_cast %0 : vector<2x32x64xf32> to vector<64x64xf32>
    %2 = arith.truncf %1 : vector<64x64xf32> to vector<64x64xbf16>
    %c0_2 = arith.constant 0 : index
    %c0_3 = arith.constant 0 : index
    %3 = vector.load %arg1[%c0_2, %c0_3] : memref<64x64xbf16, #tpu.memory_space<vmem>>, vector<64x64xbf16>
    %cst = arith.constant dense<0.000000e+00> : vector<64x64xf32>
    %4 = tpu.matmul %2, %3, %cst {dimension_numbers = #tpu.dot_dimension_numbers<[1], [0], [0], [1], [0, 0, 1, 1], [], []>} : vector<64x64xbf16>, vector<64x64xbf16>, vector<64x64xf32> -> vector<64x64xf32>
    %c0_4 = arith.constant 0 : index
    %c0_5 = arith.constant 0 : index
    %5 = vector.load %arg2[%c0_4, %c0_5] : memref<1x64xf32, #tpu.memory_space<vmem>>, vector<1x64xf32>
    %6 = vector.broadcast %5 : vector<1x64xf32> to vector<64x64xf32>
    %7 = arith.addf %4, %6 : vector<64x64xf32>
    %cst_6 = arith.constant 0.000000e+00 : f32
    %8 = vector.broadcast %cst_6 : f32 to vector<64x64xf32>
    %9 = arith.maximumf %7, %8 : vector<64x64xf32>
    %c0_7 = arith.constant 0 : index
    %c0_8 = arith.constant 0 : index
    %10 = vector.load %arg3[%c0_7, %c0_8] : memref<1x64xf32, #tpu.memory_space<vmem>>, vector<1x64xf32>
    %c0_9 = arith.constant 0 : index
    %c0_10 = arith.constant 0 : index
    %11 = vector.load %arg4[%c0_9, %c0_10] : memref<1x64xf32, #tpu.memory_space<vmem>>, vector<1x64xf32>
    %cst_11 = arith.constant dense<0.000000e+00> : vector<64xf32>
    %12 = vector.multi_reduction <add>, %9, %cst_11 [0] : vector<64x64xf32> to vector<64xf32>
    %13 = vector.shape_cast %12 : vector<64xf32> to vector<1x64xf32>
    %14 = arith.mulf %9, %9 : vector<64x64xf32>
    %cst_12 = arith.constant dense<0.000000e+00> : vector<64xf32>
    %15 = vector.multi_reduction <add>, %14, %cst_12 [0] : vector<64x64xf32> to vector<64xf32>
    %16 = vector.shape_cast %15 : vector<64xf32> to vector<1x64xf32>
    %cst_13 = arith.constant 1.562500e-02 : f32
    %17 = vector.broadcast %cst_13 : f32 to vector<1x64xf32>
    %18 = arith.mulf %13, %17 : vector<1x64xf32>
    %cst_14 = arith.constant 1.562500e-02 : f32
    %19 = vector.broadcast %cst_14 : f32 to vector<1x64xf32>
    %20 = arith.mulf %16, %19 : vector<1x64xf32>
    %21 = arith.mulf %18, %18 : vector<1x64xf32>
    %22 = arith.subf %20, %21 : vector<1x64xf32>
    %23 = vector.broadcast %18 : vector<1x64xf32> to vector<64x64xf32>
    %24 = arith.subf %9, %23 : vector<64x64xf32>
    %cst_15 = arith.constant 9.99999974E-6 : f32
    %25 = vector.broadcast %cst_15 : f32 to vector<1x64xf32>
    %26 = arith.addf %22, %25 : vector<1x64xf32>
    %27 = math.rsqrt %26 : vector<1x64xf32>
    %28 = vector.broadcast %27 : vector<1x64xf32> to vector<64x64xf32>
    %29 = arith.mulf %24, %28 : vector<64x64xf32>
    %30 = vector.broadcast %10 : vector<1x64xf32> to vector<64x64xf32>
    %31 = arith.mulf %29, %30 : vector<64x64xf32>
    %32 = vector.broadcast %11 : vector<1x64xf32> to vector<64x64xf32>
    %33 = arith.addf %31, %32 : vector<64x64xf32>
    %34 = tpu.iota {dimensions = array<i32: 0>} : vector<64x1xi32>
    %c32_i32 = arith.constant 32 : i32
    %c0_i32 = arith.constant 0 : i32
    %35 = arith.cmpi eq, %c32_i32, %c0_i32 : i32
    %c1_i32 = arith.constant 1 : i32
    %36 = arith.select %35, %c1_i32, %c32_i32 : i32
    %37 = vector.broadcast %36 : i32 to vector<64x1xi32>
    %38 = arith.remsi %34, %37 : vector<64x1xi32>
    %c0_i32_16 = arith.constant 0 : i32
    %39 = vector.broadcast %c0_i32_16 : i32 to vector<64x1xi32>
    %40 = arith.cmpi ne, %38, %39 : vector<64x1xi32>
    %c0_i32_17 = arith.constant 0 : i32
    %41 = vector.broadcast %c0_i32_17 : i32 to vector<64x1xi32>
    %42 = arith.cmpi slt, %38, %41 : vector<64x1xi32>
    %c0_i32_18 = arith.constant 0 : i32
    %43 = arith.cmpi slt, %36, %c0_i32_18 : i32
    %44 = vector.broadcast %43 : i1 to vector<64x1xi1>
    %45 = vector.broadcast %44 : vector<64x1xi1> to vector<64x1xi1>
    %46 = arith.xori %42, %45 : vector<64x1xi1>
    %47 = arith.andi %46, %40 : vector<64x1xi1>
    %48 = vector.broadcast %36 : i32 to vector<64x1xi32>
    %49 = arith.addi %38, %48 : vector<64x1xi32>
    %50 = arith.select %47, %49, %38 : vector<64x1xi1>, vector<64x1xi32>
    %c-2_i32 = arith.constant -2 : i32
    %51 = vector.broadcast %c-2_i32 : i32 to vector<64x1xi32>
    %52 = arith.addi %50, %51 : vector<64x1xi32>
    %c0_i32_19 = arith.constant 0 : i32
    %53 = vector.broadcast %c0_i32_19 : i32 to vector<64x1xi32>
    %54 = arith.cmpi sge, %52, %53 : vector<64x1xi32>
    %c-2_i32_20 = arith.constant -2 : i32
    %55 = vector.broadcast %c-2_i32_20 : i32 to vector<64x1xi32>
    %56 = arith.addi %50, %55 : vector<64x1xi32>
    %c32_i32_21 = arith.constant 32 : i32
    %57 = vector.broadcast %c32_i32_21 : i32 to vector<64x1xi32>
    %58 = arith.cmpi slt, %56, %57 : vector<64x1xi32>
    %59 = arith.andi %54, %58 : vector<64x1xi1>
    %60 = arith.extui %59 : vector<64x1xi1> to vector<64x1xi32>
    %61 = arith.sitofp %60 : vector<64x1xi32> to vector<64x1xf32>
    %c2_i32 = arith.constant 2 : i32
    %62 = vector.broadcast %c2_i32 : i32 to vector<64x1xi32>
    %63 = arith.addi %50, %62 : vector<64x1xi32>
    %c0_i32_22 = arith.constant 0 : i32
    %64 = vector.broadcast %c0_i32_22 : i32 to vector<64x1xi32>
    %65 = arith.cmpi sge, %63, %64 : vector<64x1xi32>
    %c2_i32_23 = arith.constant 2 : i32
    %66 = vector.broadcast %c2_i32_23 : i32 to vector<64x1xi32>
    %67 = arith.addi %50, %66 : vector<64x1xi32>
    %c32_i32_24 = arith.constant 32 : i32
    %68 = vector.broadcast %c32_i32_24 : i32 to vector<64x1xi32>
    %69 = arith.cmpi slt, %67, %68 : vector<64x1xi32>
    %70 = arith.andi %65, %69 : vector<64x1xi1>
    %71 = arith.extui %70 : vector<64x1xi1> to vector<64x1xi32>
    %72 = arith.sitofp %71 : vector<64x1xi32> to vector<64x1xf32>
    %73 = vector.extract_strided_slice %33 {offsets = [0, 0], sizes = [64, 16], strides = [1, 1]} : vector<64x64xf32> to vector<64x16xf32>
    %74 = arith.truncf %73 : vector<64x16xf32> to vector<64x16xbf16>
    %c0_25 = arith.constant 0 : index
    %c0_26 = arith.constant 0 : index
    %c0_27 = arith.constant 0 : index
    %75 = vector.load %arg5[%c0_25, %c0_26, %c0_27] : memref<3x16x48xbf16, #tpu.memory_space<vmem>>, vector<1x16x48xbf16>
    %76 = vector.shape_cast %75 : vector<1x16x48xbf16> to vector<16x48xbf16>
    %cst_28 = arith.constant dense<0.000000e+00> : vector<64x48xf32>
    %77 = tpu.matmul %74, %76, %cst_28 {dimension_numbers = #tpu.dot_dimension_numbers<[1], [0], [0], [1], [0, 0, 1, 1], [], []>} : vector<64x16xbf16>, vector<16x48xbf16>, vector<64x48xf32> -> vector<64x48xf32>
    %78 = vector.extract_strided_slice %77 {offsets = [0, 0], sizes = [64, 16], strides = [1, 1]} : vector<64x48xf32> to vector<64x16xf32>
    %c2_i32_29 = arith.constant 2 : i32
    %79 = tpu.dynamic_rotate %78 by %c2_i32_29 dim 0 : vector<64x16xf32>, i32 -> vector<64x16xf32>
    %80 = vector.broadcast %61 : vector<64x1xf32> to vector<64x16xf32>
    %81 = arith.mulf %79, %80 : vector<64x16xf32>
    %82 = vector.extract_strided_slice %77 {offsets = [0, 16], sizes = [64, 16], strides = [1, 1]} : vector<64x48xf32> to vector<64x16xf32>
    %83 = arith.addf %81, %82 : vector<64x16xf32>
    %84 = vector.extract_strided_slice %77 {offsets = [0, 32], sizes = [64, 16], strides = [1, 1]} : vector<64x48xf32> to vector<64x16xf32>
    %c62_i32 = arith.constant 62 : i32
    %85 = tpu.dynamic_rotate %84 by %c62_i32 dim 0 : vector<64x16xf32>, i32 -> vector<64x16xf32>
    %86 = vector.broadcast %72 : vector<64x1xf32> to vector<64x16xf32>
    %87 = arith.mulf %85, %86 : vector<64x16xf32>
    %88 = arith.addf %83, %87 : vector<64x16xf32>
    %c0_30 = arith.constant 0 : index
    %c0_31 = arith.constant 0 : index
    %89 = vector.load %arg6[%c0_30, %c0_31] : memref<3x16xf32, #tpu.memory_space<vmem>>, vector<1x16xf32>
    %90 = vector.broadcast %89 : vector<1x16xf32> to vector<64x16xf32>
    %91 = arith.addf %88, %90 : vector<64x16xf32>
    %cst_32 = arith.constant 0.000000e+00 : f32
    %92 = vector.broadcast %cst_32 : f32 to vector<64x16xf32>
    %93 = arith.maximumf %91, %92 : vector<64x16xf32>
    %c0_33 = arith.constant 0 : index
    %c0_34 = arith.constant 0 : index
    %94 = vector.load %arg7[%c0_33, %c0_34] : memref<3x16xf32, #tpu.memory_space<vmem>>, vector<1x16xf32>
    %c0_35 = arith.constant 0 : index
    %c0_36 = arith.constant 0 : index
    %95 = vector.load %arg8[%c0_35, %c0_36] : memref<3x16xf32, #tpu.memory_space<vmem>>, vector<1x16xf32>
    %cst_37 = arith.constant dense<0.000000e+00> : vector<16xf32>
    %96 = vector.multi_reduction <add>, %93, %cst_37 [0] : vector<64x16xf32> to vector<16xf32>
    %97 = vector.shape_cast %96 : vector<16xf32> to vector<1x16xf32>
    %98 = arith.mulf %93, %93 : vector<64x16xf32>
    %cst_38 = arith.constant dense<0.000000e+00> : vector<16xf32>
    %99 = vector.multi_reduction <add>, %98, %cst_38 [0] : vector<64x16xf32> to vector<16xf32>
    %100 = vector.shape_cast %99 : vector<16xf32> to vector<1x16xf32>
    %cst_39 = arith.constant 1.562500e-02 : f32
    %101 = vector.broadcast %cst_39 : f32 to vector<1x16xf32>
    %102 = arith.mulf %97, %101 : vector<1x16xf32>
    %cst_40 = arith.constant 1.562500e-02 : f32
    %103 = vector.broadcast %cst_40 : f32 to vector<1x16xf32>
    %104 = arith.mulf %100, %103 : vector<1x16xf32>
    %105 = arith.mulf %102, %102 : vector<1x16xf32>
    %106 = arith.subf %104, %105 : vector<1x16xf32>
    %107 = vector.broadcast %102 : vector<1x16xf32> to vector<64x16xf32>
    %108 = arith.subf %93, %107 : vector<64x16xf32>
    %cst_41 = arith.constant 9.99999974E-6 : f32
    %109 = vector.broadcast %cst_41 : f32 to vector<1x16xf32>
    %110 = arith.addf %106, %109 : vector<1x16xf32>
    %111 = math.rsqrt %110 : vector<1x16xf32>
    %112 = vector.broadcast %111 : vector<1x16xf32> to vector<64x16xf32>
    %113 = arith.mulf %108, %112 : vector<64x16xf32>
    %114 = vector.broadcast %94 : vector<1x16xf32> to vector<64x16xf32>
    %115 = arith.mulf %113, %114 : vector<64x16xf32>
    %116 = vector.broadcast %95 : vector<1x16xf32> to vector<64x16xf32>
    %117 = arith.addf %115, %116 : vector<64x16xf32>
    %118 = arith.truncf %117 : vector<64x16xf32> to vector<64x16xbf16>
    %c0_42 = arith.constant 0 : index
    %c0_43 = arith.constant 0 : index
    %119 = vector.load %arg16[%c0_42, %c0_43] : memref<64x64xbf16, #tpu.memory_space<vmem>>, vector<64x16xbf16>
    tpu.vector_store %arg16[%c0_42, %c0_43], %118 {strides = array<i32>} : memref<64x64xbf16, #tpu.memory_space<vmem>>, vector<64x16xbf16>,
    %120 = vector.extract_strided_slice %33 {offsets = [0, 16], sizes = [64, 16], strides = [1, 1]} : vector<64x64xf32> to vector<64x16xf32>
    %121 = arith.addf %117, %120 : vector<64x16xf32>
    %122 = arith.truncf %121 : vector<64x16xf32> to vector<64x16xbf16>
    %c1 = arith.constant 1 : index
    %c0_44 = arith.constant 0 : index
    %c0_45 = arith.constant 0 : index
    %123 = vector.load %arg5[%c1, %c0_44, %c0_45] : memref<3x16x48xbf16, #tpu.memory_space<vmem>>, vector<1x16x48xbf16>
    %124 = vector.shape_cast %123 : vector<1x16x48xbf16> to vector<16x48xbf16>
    %cst_46 = arith.constant dense<0.000000e+00> : vector<64x48xf32>
    %125 = tpu.matmul %122, %124, %cst_46 {dimension_numbers = #tpu.dot_dimension_numbers<[1], [0], [0], [1], [0, 0, 1, 1], [], []>} : vector<64x16xbf16>, vector<16x48xbf16>, vector<64x48xf32> -> vector<64x48xf32>
    %126 = vector.extract_strided_slice %125 {offsets = [0, 0], sizes = [64, 16], strides = [1, 1]} : vector<64x48xf32> to vector<64x16xf32>
    %c2_i32_47 = arith.constant 2 : i32
    %127 = tpu.dynamic_rotate %126 by %c2_i32_47 dim 0 : vector<64x16xf32>, i32 -> vector<64x16xf32>
    %128 = vector.broadcast %61 : vector<64x1xf32> to vector<64x16xf32>
    %129 = arith.mulf %127, %128 : vector<64x16xf32>
    %130 = vector.extract_strided_slice %125 {offsets = [0, 16], sizes = [64, 16], strides = [1, 1]} : vector<64x48xf32> to vector<64x16xf32>
    %131 = arith.addf %129, %130 : vector<64x16xf32>
    %132 = vector.extract_strided_slice %125 {offsets = [0, 32], sizes = [64, 16], strides = [1, 1]} : vector<64x48xf32> to vector<64x16xf32>
    %c62_i32_48 = arith.constant 62 : i32
    %133 = tpu.dynamic_rotate %132 by %c62_i32_48 dim 0 : vector<64x16xf32>, i32 -> vector<64x16xf32>
    %134 = vector.broadcast %72 : vector<64x1xf32> to vector<64x16xf32>
    %135 = arith.mulf %133, %134 : vector<64x16xf32>
    %136 = arith.addf %131, %135 : vector<64x16xf32>
    %c1_49 = arith.constant 1 : index
    %c0_50 = arith.constant 0 : index
    %137 = vector.load %arg6[%c1_49, %c0_50] : memref<3x16xf32, #tpu.memory_space<vmem>>, vector<1x16xf32>
    %138 = vector.broadcast %137 : vector<1x16xf32> to vector<64x16xf32>
    %139 = arith.addf %136, %138 : vector<64x16xf32>
    %cst_51 = arith.constant 0.000000e+00 : f32
    %140 = vector.broadcast %cst_51 : f32 to vector<64x16xf32>
    %141 = arith.maximumf %139, %140 : vector<64x16xf32>
    %c1_52 = arith.constant 1 : index
    %c0_53 = arith.constant 0 : index
    %142 = vector.load %arg7[%c1_52, %c0_53] : memref<3x16xf32, #tpu.memory_space<vmem>>, vector<1x16xf32>
    %c1_54 = arith.constant 1 : index
    %c0_55 = arith.constant 0 : index
    %143 = vector.load %arg8[%c1_54, %c0_55] : memref<3x16xf32, #tpu.memory_space<vmem>>, vector<1x16xf32>
    %cst_56 = arith.constant dense<0.000000e+00> : vector<16xf32>
    %144 = vector.multi_reduction <add>, %141, %cst_56 [0] : vector<64x16xf32> to vector<16xf32>
    %145 = vector.shape_cast %144 : vector<16xf32> to vector<1x16xf32>
    %146 = arith.mulf %141, %141 : vector<64x16xf32>
    %cst_57 = arith.constant dense<0.000000e+00> : vector<16xf32>
    %147 = vector.multi_reduction <add>, %146, %cst_57 [0] : vector<64x16xf32> to vector<16xf32>
    %148 = vector.shape_cast %147 : vector<16xf32> to vector<1x16xf32>
    %cst_58 = arith.constant 1.562500e-02 : f32
    %149 = vector.broadcast %cst_58 : f32 to vector<1x16xf32>
    %150 = arith.mulf %145, %149 : vector<1x16xf32>
    %cst_59 = arith.constant 1.562500e-02 : f32
    %151 = vector.broadcast %cst_59 : f32 to vector<1x16xf32>
    %152 = arith.mulf %148, %151 : vector<1x16xf32>
    %153 = arith.mulf %150, %150 : vector<1x16xf32>
    %154 = arith.subf %152, %153 : vector<1x16xf32>
    %155 = vector.broadcast %150 : vector<1x16xf32> to vector<64x16xf32>
    %156 = arith.subf %141, %155 : vector<64x16xf32>
    %cst_60 = arith.constant 9.99999974E-6 : f32
    %157 = vector.broadcast %cst_60 : f32 to vector<1x16xf32>
    %158 = arith.addf %154, %157 : vector<1x16xf32>
    %159 = math.rsqrt %158 : vector<1x16xf32>
    %160 = vector.broadcast %159 : vector<1x16xf32> to vector<64x16xf32>
    %161 = arith.mulf %156, %160 : vector<64x16xf32>
    %162 = vector.broadcast %142 : vector<1x16xf32> to vector<64x16xf32>
    %163 = arith.mulf %161, %162 : vector<64x16xf32>
    %164 = vector.broadcast %143 : vector<1x16xf32> to vector<64x16xf32>
    %165 = arith.addf %163, %164 : vector<64x16xf32>
    %166 = arith.truncf %165 : vector<64x16xf32> to vector<64x16xbf16>
    %c0_61 = arith.constant 0 : index
    %c16 = arith.constant 16 : index
    %167 = vector.load %arg16[%c0_61, %c16] : memref<64x64xbf16, #tpu.memory_space<vmem>>, vector<64x16xbf16>
    tpu.vector_store %arg16[%c0_61, %c16], %166 {strides = array<i32>} : memref<64x64xbf16, #tpu.memory_space<vmem>>, vector<64x16xbf16>,
    %168 = vector.extract_strided_slice %33 {offsets = [0, 32], sizes = [64, 16], strides = [1, 1]} : vector<64x64xf32> to vector<64x16xf32>
    %169 = arith.addf %165, %168 : vector<64x16xf32>
    %170 = arith.truncf %169 : vector<64x16xf32> to vector<64x16xbf16>
    %c2 = arith.constant 2 : index
    %c0_62 = arith.constant 0 : index
    %c0_63 = arith.constant 0 : index
    %171 = vector.load %arg5[%c2, %c0_62, %c0_63] : memref<3x16x48xbf16, #tpu.memory_space<vmem>>, vector<1x16x48xbf16>
    %172 = vector.shape_cast %171 : vector<1x16x48xbf16> to vector<16x48xbf16>
    %cst_64 = arith.constant dense<0.000000e+00> : vector<64x48xf32>
    %173 = tpu.matmul %170, %172, %cst_64 {dimension_numbers = #tpu.dot_dimension_numbers<[1], [0], [0], [1], [0, 0, 1, 1], [], []>} : vector<64x16xbf16>, vector<16x48xbf16>, vector<64x48xf32> -> vector<64x48xf32>
    %174 = vector.extract_strided_slice %173 {offsets = [0, 0], sizes = [64, 16], strides = [1, 1]} : vector<64x48xf32> to vector<64x16xf32>
    %c2_i32_65 = arith.constant 2 : i32
    %175 = tpu.dynamic_rotate %174 by %c2_i32_65 dim 0 : vector<64x16xf32>, i32 -> vector<64x16xf32>
    %176 = vector.broadcast %61 : vector<64x1xf32> to vector<64x16xf32>
    %177 = arith.mulf %175, %176 : vector<64x16xf32>
    %178 = vector.extract_strided_slice %173 {offsets = [0, 16], sizes = [64, 16], strides = [1, 1]} : vector<64x48xf32> to vector<64x16xf32>
    %179 = arith.addf %177, %178 : vector<64x16xf32>
    %180 = vector.extract_strided_slice %173 {offsets = [0, 32], sizes = [64, 16], strides = [1, 1]} : vector<64x48xf32> to vector<64x16xf32>
    %c62_i32_66 = arith.constant 62 : i32
    %181 = tpu.dynamic_rotate %180 by %c62_i32_66 dim 0 : vector<64x16xf32>, i32 -> vector<64x16xf32>
    %182 = vector.broadcast %72 : vector<64x1xf32> to vector<64x16xf32>
    %183 = arith.mulf %181, %182 : vector<64x16xf32>
    %184 = arith.addf %179, %183 : vector<64x16xf32>
    %c2_67 = arith.constant 2 : index
    %c0_68 = arith.constant 0 : index
    %185 = vector.load %arg6[%c2_67, %c0_68] : memref<3x16xf32, #tpu.memory_space<vmem>>, vector<1x16xf32>
    %186 = vector.broadcast %185 : vector<1x16xf32> to vector<64x16xf32>
    %187 = arith.addf %184, %186 : vector<64x16xf32>
    %cst_69 = arith.constant 0.000000e+00 : f32
    %188 = vector.broadcast %cst_69 : f32 to vector<64x16xf32>
    %189 = arith.maximumf %187, %188 : vector<64x16xf32>
    %c2_70 = arith.constant 2 : index
    %c0_71 = arith.constant 0 : index
    %190 = vector.load %arg7[%c2_70, %c0_71] : memref<3x16xf32, #tpu.memory_space<vmem>>, vector<1x16xf32>
    %c2_72 = arith.constant 2 : index
    %c0_73 = arith.constant 0 : index
    %191 = vector.load %arg8[%c2_72, %c0_73] : memref<3x16xf32, #tpu.memory_space<vmem>>, vector<1x16xf32>
    %cst_74 = arith.constant dense<0.000000e+00> : vector<16xf32>
    %192 = vector.multi_reduction <add>, %189, %cst_74 [0] : vector<64x16xf32> to vector<16xf32>
    %193 = vector.shape_cast %192 : vector<16xf32> to vector<1x16xf32>
    %194 = arith.mulf %189, %189 : vector<64x16xf32>
    %cst_75 = arith.constant dense<0.000000e+00> : vector<16xf32>
    %195 = vector.multi_reduction <add>, %194, %cst_75 [0] : vector<64x16xf32> to vector<16xf32>
    %196 = vector.shape_cast %195 : vector<16xf32> to vector<1x16xf32>
    %cst_76 = arith.constant 1.562500e-02 : f32
    %197 = vector.broadcast %cst_76 : f32 to vector<1x16xf32>
    %198 = arith.mulf %193, %197 : vector<1x16xf32>
    %cst_77 = arith.constant 1.562500e-02 : f32
    %199 = vector.broadcast %cst_77 : f32 to vector<1x16xf32>
    %200 = arith.mulf %196, %199 : vector<1x16xf32>
    %201 = arith.mulf %198, %198 : vector<1x16xf32>
    %202 = arith.subf %200, %201 : vector<1x16xf32>
    %203 = vector.broadcast %198 : vector<1x16xf32> to vector<64x16xf32>
    %204 = arith.subf %189, %203 : vector<64x16xf32>
    %cst_78 = arith.constant 9.99999974E-6 : f32
    %205 = vector.broadcast %cst_78 : f32 to vector<1x16xf32>
    %206 = arith.addf %202, %205 : vector<1x16xf32>
    %207 = math.rsqrt %206 : vector<1x16xf32>
    %208 = vector.broadcast %207 : vector<1x16xf32> to vector<64x16xf32>
    %209 = arith.mulf %204, %208 : vector<64x16xf32>
    %210 = vector.broadcast %190 : vector<1x16xf32> to vector<64x16xf32>
    %211 = arith.mulf %209, %210 : vector<64x16xf32>
    %212 = vector.broadcast %191 : vector<1x16xf32> to vector<64x16xf32>
    %213 = arith.addf %211, %212 : vector<64x16xf32>
    %214 = arith.truncf %213 : vector<64x16xf32> to vector<64x16xbf16>
    %c0_79 = arith.constant 0 : index
    %c32 = arith.constant 32 : index
    %215 = vector.load %arg16[%c0_79, %c32] : memref<64x64xbf16, #tpu.memory_space<vmem>>, vector<64x16xbf16>
    tpu.vector_store %arg16[%c0_79, %c32], %214 {strides = array<i32>} : memref<64x64xbf16, #tpu.memory_space<vmem>>, vector<64x16xbf16>,
    %216 = vector.extract_strided_slice %33 {offsets = [0, 48], sizes = [64, 16], strides = [1, 1]} : vector<64x64xf32> to vector<64x16xf32>
    %217 = arith.truncf %216 : vector<64x16xf32> to vector<64x16xbf16>
    %c0_80 = arith.constant 0 : index
    %c48 = arith.constant 48 : index
    %218 = vector.load %arg16[%c0_80, %c48] : memref<64x64xbf16, #tpu.memory_space<vmem>>, vector<64x16xbf16>
    tpu.vector_store %arg16[%c0_80, %c48], %217 {strides = array<i32>} : memref<64x64xbf16, #tpu.memory_space<vmem>>, vector<64x16xbf16>,
    %c0_81 = arith.constant 0 : index
    %c0_82 = arith.constant 0 : index
    %219 = vector.load %arg16[%c0_81, %c0_82] : memref<64x64xbf16, #tpu.memory_space<vmem>>, vector<64x64xbf16>
    %c0_83 = arith.constant 0 : index
    %c0_84 = arith.constant 0 : index
    %220 = vector.load %arg9[%c0_83, %c0_84] : memref<64x64xbf16, #tpu.memory_space<vmem>>, vector<64x64xbf16>
    %cst_85 = arith.constant dense<0.000000e+00> : vector<64x64xf32>
    %221 = tpu.matmul %219, %220, %cst_85 {dimension_numbers = #tpu.dot_dimension_numbers<[1], [0], [0], [1], [0, 0, 1, 1], [], []>} : vector<64x64xbf16>, vector<64x64xbf16>, vector<64x64xf32> -> vector<64x64xf32>
    %c0_86 = arith.constant 0 : index
    %c0_87 = arith.constant 0 : index
    %222 = vector.load %arg10[%c0_86, %c0_87] : memref<1x64xf32, #tpu.memory_space<vmem>>, vector<1x64xf32>
    %223 = vector.broadcast %222 : vector<1x64xf32> to vector<64x64xf32>
    %224 = arith.addf %221, %223 : vector<64x64xf32>
    %cst_88 = arith.constant 0.000000e+00 : f32
    %225 = vector.broadcast %cst_88 : f32 to vector<64x64xf32>
    %226 = arith.maximumf %224, %225 : vector<64x64xf32>
    %c0_89 = arith.constant 0 : index
    %c0_90 = arith.constant 0 : index
    %227 = vector.load %arg11[%c0_89, %c0_90] : memref<1x64xf32, #tpu.memory_space<vmem>>, vector<1x64xf32>
    %c0_91 = arith.constant 0 : index
    %c0_92 = arith.constant 0 : index
    %228 = vector.load %arg12[%c0_91, %c0_92] : memref<1x64xf32, #tpu.memory_space<vmem>>, vector<1x64xf32>
    %cst_93 = arith.constant dense<0.000000e+00> : vector<64xf32>
    %229 = vector.multi_reduction <add>, %226, %cst_93 [0] : vector<64x64xf32> to vector<64xf32>
    %230 = vector.shape_cast %229 : vector<64xf32> to vector<1x64xf32>
    %231 = arith.mulf %226, %226 : vector<64x64xf32>
    %cst_94 = arith.constant dense<0.000000e+00> : vector<64xf32>
    %232 = vector.multi_reduction <add>, %231, %cst_94 [0] : vector<64x64xf32> to vector<64xf32>
    %233 = vector.shape_cast %232 : vector<64xf32> to vector<1x64xf32>
    %cst_95 = arith.constant 1.562500e-02 : f32
    %234 = vector.broadcast %cst_95 : f32 to vector<1x64xf32>
    %235 = arith.mulf %230, %234 : vector<1x64xf32>
    %cst_96 = arith.constant 1.562500e-02 : f32
    %236 = vector.broadcast %cst_96 : f32 to vector<1x64xf32>
    %237 = arith.mulf %233, %236 : vector<1x64xf32>
    %238 = arith.mulf %235, %235 : vector<1x64xf32>
    %239 = arith.subf %237, %238 : vector<1x64xf32>
    %240 = vector.broadcast %235 : vector<1x64xf32> to vector<64x64xf32>
    %241 = arith.subf %226, %240 : vector<64x64xf32>
    %cst_97 = arith.constant 9.99999974E-6 : f32
    %242 = vector.broadcast %cst_97 : f32 to vector<1x64xf32>
    %243 = arith.addf %239, %242 : vector<1x64xf32>
    %244 = math.rsqrt %243 : vector<1x64xf32>
    %245 = vector.broadcast %244 : vector<1x64xf32> to vector<64x64xf32>
    %246 = arith.mulf %241, %245 : vector<64x64xf32>
    %247 = vector.broadcast %227 : vector<1x64xf32> to vector<64x64xf32>
    %248 = arith.mulf %246, %247 : vector<64x64xf32>
    %249 = vector.broadcast %228 : vector<1x64xf32> to vector<64x64xf32>
    %250 = arith.addf %248, %249 : vector<64x64xf32>
    %251 = vector.shape_cast %250 : vector<64x64xf32> to vector<2x32x64xf32>
    %cst_98 = arith.constant dense<0.000000e+00> : vector<2x64xf32>
    %252 = vector.multi_reduction <add>, %251, %cst_98 [1] : vector<2x32x64xf32> to vector<2x64xf32>
    %cst_99 = arith.constant 3.200000e+01 : f32
    %253 = vector.broadcast %cst_99 : f32 to vector<2x64xf32>
    %254 = arith.divf %252, %253 : vector<2x64xf32>
    %255 = arith.truncf %254 : vector<2x64xf32> to vector<2x64xbf16>
    %c0_100 = arith.constant 0 : index
    %c0_101 = arith.constant 0 : index
    %256 = vector.load %arg13[%c0_100, %c0_101] : memref<64x16xbf16, #tpu.memory_space<vmem>>, vector<64x16xbf16>
    %cst_102 = arith.constant dense<0.000000e+00> : vector<2x16xf32>
    %257 = tpu.matmul %255, %256, %cst_102 {dimension_numbers = #tpu.dot_dimension_numbers<[1], [0], [0], [1], [0, 0, 1, 1], [], []>} : vector<2x64xbf16>, vector<64x16xbf16>, vector<2x16xf32> -> vector<2x16xf32>
    %cst_103 = arith.constant 0.000000e+00 : f32
    %258 = vector.broadcast %cst_103 : f32 to vector<2x16xf32>
    %259 = arith.maximumf %257, %258 : vector<2x16xf32>
    %260 = arith.truncf %259 : vector<2x16xf32> to vector<2x16xbf16>
    %c0_104 = arith.constant 0 : index
    %c0_105 = arith.constant 0 : index
    %261 = vector.load %arg14[%c0_104, %c0_105] : memref<16x64xbf16, #tpu.memory_space<vmem>>, vector<16x64xbf16>
    %cst_106 = arith.constant dense<0.000000e+00> : vector<2x64xf32>
    %262 = tpu.matmul %260, %261, %cst_106 {dimension_numbers = #tpu.dot_dimension_numbers<[1], [0], [0], [1], [0, 0, 1, 1], [], []>} : vector<2x16xbf16>, vector<16x64xbf16>, vector<2x64xf32> -> vector<2x64xf32>
    %263 = arith.negf %262 : vector<2x64xf32>
    %264 = math.exp %263 : vector<2x64xf32>
    %cst_107 = arith.constant 1.000000e+00 : f32
    %265 = vector.broadcast %cst_107 : f32 to vector<2x64xf32>
    %266 = arith.addf %265, %264 : vector<2x64xf32>
    %267 = arith.divf %265, %266 : vector<2x64xf32>
    %268 = vector.shape_cast %267 : vector<2x64xf32> to vector<2x1x64xf32>
    %269 = vector.broadcast %268 : vector<2x1x64xf32> to vector<2x32x64xf32>
    %270 = arith.mulf %251, %269 : vector<2x32x64xf32>
    %c0_108 = arith.constant 0 : index
    %c0_109 = arith.constant 0 : index
    %c0_110 = arith.constant 0 : index
    %271 = vector.load %arg0[%c0_108, %c0_109, %c0_110] : memref<2x32x64xf32, #tpu.memory_space<vmem>>, vector<2x32x64xf32>
    %272 = arith.addf %270, %271 : vector<2x32x64xf32>
    %c0_111 = arith.constant 0 : index
    %c0_112 = arith.constant 0 : index
    %c0_113 = arith.constant 0 : index
    %273 = vector.load %arg15[%c0_111, %c0_112, %c0_113] : memref<2x32x64xf32, #tpu.memory_space<vmem>>, vector<2x32x64xf32>
    tpu.vector_store %arg15[%c0_111, %c0_112, %c0_113], %272 {strides = array<i32>} : memref<2x32x64xf32, #tpu.memory_space<vmem>>, vector<2x32x64xf32>,
    return
  }
}

</mosaic_0001>

<bundles_post_ra>
// kernel: tpu_custom_call.1
= control target key start
LH: loop header
LB: loop body
LE: loop exit
PB: predicated region body
PF: predicated region fallthrough
CT: control target
= control target key end

     0   :  { %20 = vsyncpa [#allocation4], 0  ;;  %s3637_s0 = inlined_call_operand.hbm [shape: f32[2,32,64], index: 0, kind: input, shape index: {}]   ;;  %s3638_s1 = inlined_call_operand.vmem [shape: bf16[64,64], index: 1, kind: input, shape index: {}]   ;;  %s3639_s2 = inlined_call_operand.hbm [shape: f32[1,64], index: 2, kind: input, shape index: {}]   ;;  %s3640_s3 = inlined_call_operand.hbm [shape: f32[1,64], index: 3, kind: input, shape index: {}]   ;;  %s3641_s4 = inlined_call_operand.hbm [shape: f32[1,64], index: 4, kind: input, shape index: {}]   ;;  %s3642_s5 = inlined_call_operand.hbm [shape: bf16[3,16,48], index: 5, kind: input, shape index: {}]   ;;  %s3643_s6 = inlined_call_operand.vmem [shape: f32[3,16], index: 6, kind: input, shape index: {}]   ;;  %s3644_s7 = inlined_call_operand.hbm [shape: f32[3,16], index: 7, kind: input, shape index: {}]   ;;  %s3645_s8 = inlined_call_operand.hbm [shape: f32[3,16], index: 8, kind: input, shape index: {}]   ;;  %s3646_s9 = inlined_call_operand.hbm [shape: bf16[64,64], index: 9, kind: input, shape index: {}]   ;;  %s3647_s10 = inlined_call_operand.hbm [shape: f32[1,64], index: 10, kind: input, shape index: {}]   ;;  %s3648_s11 = inlined_call_operand.hbm [shape: f32[1,64], index: 11, kind: input, shape index: {}]   ;;  %s3649_s12 = inlined_call_operand.hbm [shape: f32[1,64], index: 12, kind: input, shape index: {}]   ;;  %s3650_s13 = inlined_call_operand.vmem [shape: bf16[64,16], index: 13, kind: input, shape index: {}]   ;;  %s3651_s14 = inlined_call_operand.vmem [shape: bf16[16,64], index: 14, kind: input, shape index: {}]   ;;  %s3652_s15 = inlined_call_operand.hbm [shape: f32[2,32,64], index: 15, kind: output, shape index: {}]  }
   0x1   :  { %21 = vsyncpa [#allocation7], 0 }
   0x2   :  { %22 = vsyncpa [#allocation10], 0 }
   0x3   :  { %23 = vsyncpa [#allocation13], 0 }
   0x4   :  { %24 = vsyncpa [#allocation16], 0 }
   0x5   :  { %25 = vsyncpa [#allocation19], 0  ;;  %s47_s20 = sshll.u32 %s3639_s2, 4  ;;  %s48_s20 = int_to_ptr.hbm [resolvable:$true] %s47_s20 }
   0x6   :  { %26 = vsyncpa [#allocation5], 0  ;;  %s2597_s21 = smov [#allocation6]   ;;  %s69_s25 = sshll.u32 %s3641_s4, 4  ;;  %s70_s25 = int_to_ptr.hbm [resolvable:$true] %s69_s25 }
   0x7   :  { %s49_s22 = sshll.u32 %s2597_s21, 4  ;;  %s2598_s26 = smov [#allocation9]   ;;  %s50_s22 = int_to_ptr.vmem [resolvable:$true] %s49_s22 }
   0x8   :  { %52 = dma.hbm_to_vmem [thread:$0]  %s48_s20, 16, %s50_s22, [#allocation7]  }
   0x9   :  { %s71_s27 = sshll.u32 %s2598_s26, 4  ;;  %s95_s30 = sshll.u32 %s3644_s7, 4  ;;  %s72_s27 = int_to_ptr.vmem [resolvable:$true] %s71_s27  ;;  %s96_s30 = int_to_ptr.hbm [resolvable:$true] %s95_s30 }
   0xa   :  { %74 = dma.hbm_to_vmem [thread:$0]  %s70_s25, 16, %s72_s27, [#allocation10]  }
   0xb   :  { %s2599_s2 = smov [#allocation12]   ;;  %s116_s19 = sshll.u32 %s3646_s9, 4  ;;  %s117_s19 = int_to_ptr.hbm [resolvable:$true] %s116_s19 }
   0xc   :  { %s97_s16 = sshll.u32 %s2599_s2, 4  ;;  %s2600_s4 = smov [#allocation15]   ;;  %s98_s16 = int_to_ptr.vmem [resolvable:$true] %s97_s16 }
   0xd   :  { %100 = dma.hbm_to_vmem [thread:$0]  %s96_s30, 64, %s98_s16, [#allocation13]  }
   0xe   :  { %s118_s20 = sshll.u32 %s2600_s4, 4  ;;  %s141_s23 = sshll.u32 %s3648_s11, 4  ;;  %s119_s20 = int_to_ptr.vmem [resolvable:$true] %s118_s20  ;;  %s142_s23 = int_to_ptr.hbm [resolvable:$true] %s141_s23 }
   0xf   :  { %s2601_s7 = smov 64   ;;  %s2602_s24 = smov 4  }
  0x10   :  { %124 = dma.hbm_to_vmem [thread:$0]  %s117_s19, 512, %s119_s20, [#allocation16], %s2601_s7, %s2601_s7, %s2602_s24  }
  0x11   :  { %s31_s9 = sshll.u32 %s3637_s0, 4  ;;  %s2603_s27 = smov [#allocation18]   ;;  %s32_s9 = int_to_ptr.hbm [resolvable:$true] %s31_s9 }
  0x12   :  { %s143_s28 = sshll.u32 %s2603_s27, 4  ;;  %s2604_s29 = smov [#allocation3]   ;;  %s144_s28 = int_to_ptr.vmem [resolvable:$true] %s143_s28 }
  0x13   :  { %146 = dma.hbm_to_vmem [thread:$0]  %s142_s23, 16, %s144_s28, [#allocation19]  }
  0x14   :  { %s33_s30 = sshll.u32 %s2604_s29, 4  ;;  %s2605_s11 = smov 128   ;;  %s34_s30 = int_to_ptr.vmem [resolvable:$true] %s33_s30 }
  0x15   :  { %s2606_s2 = smov 8   ;;  %s58_s18 = sshll.u32 %s3640_s3, 4  ;;  %s59_s18 = int_to_ptr.hbm [resolvable:$true] %s58_s18 }
  0x16   :  { %39 = dma.hbm_to_vmem [thread:$0]  %s32_s9, 1024, %s34_s30, [#allocation4], %s2605_s11, %s2605_s11, %s2606_s2  }
  0x17   :  { %s2607_s0 = smov [#allocation8]   ;;  %s79_s21 = sshll.u32 %s3642_s5, 4  ;;  %s80_s21 = int_to_ptr.hbm [resolvable:$true] %s79_s21 }
  0x18   :  { %s60_s19 = sshll.u32 %s2607_s0, 4  ;;  %s2608_s22 = smov [#allocation11]   ;;  %s61_s19 = int_to_ptr.vmem [resolvable:$true] %s60_s19 }
  0x19   :  { %63 = dma.hbm_to_vmem [thread:$0]  %s59_s18, 16, %s61_s19, [#allocation7]  }
  0x1a   :  { %s81_s23 = sshll.u32 %s2608_s22, 4  ;;  %s106_s9 = sshll.u32 %s3645_s8, 4  ;;  %s82_s23 = int_to_ptr.vmem [resolvable:$true] %s81_s23  ;;  %s107_s9 = int_to_ptr.hbm [resolvable:$true] %s106_s9 }
  0x1b   :  { %87 = dma.hbm_to_vmem [thread:$0]  %s80_s21, 384, %s82_s23, [#allocation10], %s2601_s7, %s2601_s7, %s2602_s24  }
  0x1c   :  { %s130_s28 = sshll.u32 %s3647_s10, 4  ;;  %s2609_s29 = smov [#allocation14]   ;;  %s131_s28 = int_to_ptr.hbm [resolvable:$true] %s130_s28 }
  0x1d   :  { %s108_s5 = sshll.u32 %s2609_s29, 4  ;;  %s2610_s30 = smov [#allocation17]   ;;  %s109_s5 = int_to_ptr.vmem [resolvable:$true] %s108_s5 }
  0x1e   :  { %111 = dma.hbm_to_vmem [thread:$0]  %s107_s9, 64, %s109_s5, [#allocation13]  }
  0x1f   :  { %s132_s16 = sshll.u32 %s2610_s30, 4  ;;  %s152_s8 = sshll.u32 %s3649_s12, 4  ;;  %s133_s16 = int_to_ptr.vmem [resolvable:$true] %s132_s16  ;;  %s153_s8 = int_to_ptr.hbm [resolvable:$true] %s152_s8 }
  0x20   :  { %135 = dma.hbm_to_vmem [thread:$0]  %s131_s28, 16, %s133_s16, [#allocation16]  }
  0x21   :  { %s2611_s0 = smov [#allocation20]  }
  0x22   :  { %s154_s7 = sshll.u32 %s2611_s0, 4  ;;  %s155_s7 = int_to_ptr.vmem [resolvable:$true] %s154_s7 }
  0x23   :  { %157 = dma.hbm_to_vmem [thread:$0]  %s153_s8, 16, %s155_s7, [#allocation19]  }
  0x24   :  { %2583 = dma.done.wait [#allocation4], 1024  }
  0x25   :  { %2584 = vsyncadd [#allocation4], 4294966272 }
  0x26   :  { %2585 = dma.done.wait [#allocation7], 32  }
  0x27   :  { %2586 = vsyncadd [#allocation7], 4294967264 }
  0x28   :  { %2587 = dma.done.wait [#allocation10], 400  }
  0x29   :  { %2588 = vsyncadd [#allocation10], 4294966896 }
  0x2a   :  { %2589 = dma.done.wait [#allocation13], 128  }
  0x2b   :  { %2590 = vsyncadd [#allocation13], 4294967168 }
  0x2c   :  { %2591 = dma.done.wait [#allocation16], 528  }
  0x2d   :  { %2592 = vsyncadd [#allocation16], 4294966768 }
  0x2e   :  { %2593 = dma.done.wait [#allocation19], 32  }
  0x2f   :  { %2594 = vsyncadd [#allocation19], 4294967264  ;;  %v2223_v0 = vld [vmem:[%s3638_s1 + $0x18] sm:$0xff]  ;;  %v2222_v1 = vld [vmem:[%s3638_s1 + $0x10] sm:$0xff]  ;;  %vm255_vm0 = vcmask 523264   ;;  %vm623_vm4 = vcmask 130048  }
  0x30   :  { %272 = vmatpush.bf16.msra.mxu0 %v2223_v0  ;;  %v2221_v2 = vld [vmem:[%s3638_s1 + $0x8] sm:$0xff]  ;;  %v2220_v3 = vld [vmem:[%s3638_s1] sm:$0xff]  ;;  %v209_v7 = vld [vmem:[#allocation3 + $0x10] sm:$0xff]  ;;  %s2612_s1 = smov 96   ;;  %s2613_s23 = smov 112   ;;  %vm914_vm14 = vcmask 125952  }
  0x31   :  { %v207_v4 = vld [vmem:[#allocation3] sm:$0xff]  ;;  %v208_v5 = vld [vmem:[#allocation3 + $0x8] sm:$0xff]  ;;  %v210_v8 = vld [vmem:[#allocation3 + $0x18] sm:$0xff]  ;;  %s2615_s27 = smov 16   ;;  %s2095_s4 = sshll.u32 %s3652_s15, 4  ;;  %s2096_s4 = int_to_ptr.hbm [resolvable:$true] %s2095_s4 }
  0x32   :  { %v215_v6 = vpack.c.bf16 %v208_v5, %v207_v4  ;;  %v216_v9 = vpack.c.bf16 %v210_v8, %v209_v7  ;;  %v211_v10 = vld [vmem:[#allocation3 + $0x20] sm:$0xff]  ;;  %v212_v11 = vld [vmem:[#allocation3 + $0x28] sm:$0xff]  ;;  %v213_v13 = vld [vmem:[#allocation3 + $0x30] sm:$0xff] }
  0x33   :  { %v217_v12 = vpack.c.bf16 %v212_v11, %v211_v10  ;;  %v214_v14 = vld [vmem:[#allocation3 + $0x38] sm:$0xff]  ;;  %v2224_v19 = vld [vmem:[#allocation11] sm:$0xff]  ;;  %v2264_v22 = vld [vmem:[#allocation6] ss:$0 sm:$0xff] }
  0x34   :  { %273 = vmatpush.bf16.msra.mxu0 %v2222_v1  ;;  %v218_v15 = vpack.c.bf16 %v214_v14, %v213_v13  ;;  %2240 = vmatpush.bf16.msra.mxu1 %v2224_v19 }
  0x35   :  { %2241 = vmatpush.bf16.msra.mxu2 %v2224_v19 }
  0x38   :  { %274 = vmatpush.bf16.msra.mxu0 %v2221_v2 }
  0x3c   :  { %275 = vmatpush.bf16.msra.mxu0 %v2220_v3 }
  0x3f   :  { %2129 = vmatmul.msk.bf16.vlgmr.msra.gmra.mxu0 %vm255_vm0, %v215_v6 }
  0x40   :  { %643 = vmatpush.bf16.msrb.mxu0 %v2224_v19 }
  0x4f   :  { %2130 = vmatmul.msk.bf16.gmra.mxu0 %vm255_vm0, %v216_v9 }
  0x5f   :  { %2131 = vmatmul.msk.bf16.gmra.mxu0 %vm255_vm0, %v217_v12 }
  0x6f   :  { %2132 = vmatmul.msk.bf16.gmra.mxu0 %vm255_vm0, %v218_v15 }
  0xbc   :  { %v277_v16 = vpop.f32.mrf.mxu0 }
  0xbd   :  { %v278_v24 = vadd.f32 %v2264_v22, %v277_v16 }
  0xbf   :  { %v2759_v29 = vmax.f32 %v278_v24, 0.0 }
  0xc1   :  { %v328_v35 = vmul.f32 %v2759_v29, %v2759_v29  ;;  %v307_v39 = vsel %vm255_vm0, %v2759_v29, 0.0 }
  0xc3   :  { %v336_v46 = vsel %vm255_vm0, %v328_v35, 0.0 }
  0xc4   :  { %v279_v17 = vpop.f32.mrf.mxu0 }
  0xc5   :  { %v280_v23 = vadd.f32 %v2264_v22, %v279_v17 }
  0xc7   :  { %v2757_v26 = vmax.f32 %v280_v23, 0.0 }
  0xc9   :  { %v329_v32 = vmul.f32 %v2757_v26, %v2757_v26  ;;  %v308_v36 = vsel %vm255_vm0, %v2757_v26, 0.0 }
  0xca   :  { %v309_v47 = vadd.f32 %v308_v36, %v307_v39 }
  0xcb   :  { %v337_v40 = vsel %vm255_vm0, %v329_v32, 0.0 }
  0xcc   :  { %v282_v18 = vpop.f32.mrf.mxu0  ;;  %v338_v52 = vadd.f32 %v337_v40, %v336_v46  ;;  %v2265_v46 = vld [vmem:[#allocation8] ss:$0 sm:$0xff] }
  0xcd   :  { %v283_v25 = vadd.f32 %v2264_v22, %v282_v18 }
  0xcf   :  { %v2761_v30 = vmax.f32 %v283_v25, 0.0 }
  0xd1   :  { %v330_v37 = vmul.f32 %v2761_v30, %v2761_v30  ;;  %v310_v42 = vsel %vm255_vm0, %v2761_v30, 0.0 }
  0xd2   :  { %v311_v53 = vadd.f32 %v310_v42, %v309_v47 }
  0xd3   :  { %v339_v48 = vsel %vm255_vm0, %v330_v37, 0.0 }
  0xd4   :  { %v284_v20 = vpop.f32.mrf.mxu0  ;;  %v340_v57 = vadd.f32 %v339_v48, %v338_v52 }
  0xd5   :  { %v285_v28 = vadd.f32 %v2264_v22, %v284_v20 }
  0xd7   :  { %v2765_v33 = vmax.f32 %v285_v28, 0.0 }
  0xd9   :  { %v331_v43 = vmul.f32 %v2765_v33, %v2765_v33  ;;  %v312_v49 = vsel %vm255_vm0, %v2765_v33, 0.0 }
  0xda   :  { %v313_v58 = vadd.f32 %v312_v49, %v311_v53 }
  0xdb   :  { %v341_v54 = vsel %vm255_vm0, %v331_v43, 0.0 }
  0xdc   :  { %v287_v21 = vpop.f32.mrf.mxu0  ;;  %v342_v62 = vadd.f32 %v341_v54, %v340_v57 }
  0xdd   :  { %v288_v31 = vadd.f32 %v2264_v22, %v287_v21 }
  0xdf   :  { %v2773_v38 = vmax.f32 %v288_v31, 0.0 }
  0xe1   :  { %v332_v50 = vmul.f32 %v2773_v38, %v2773_v38  ;;  %v314_v55 = vsel %vm255_vm0, %v2773_v38, 0.0 }
  0xe2   :  { %v315_v63 = vadd.f32 %v314_v55, %v313_v58  ;;  %v2266_v55 = vld [vmem:[#allocation9] ss:$0 sm:$0xff] }
  0xe3   :  { %v343_v59 = vsel %vm255_vm0, %v332_v50, 0.0 }
  0xe4   :  { %v289_v27 = vpop.f32.mrf.mxu0  ;;  %v344_v4 = vadd.f32 %v343_v59, %v342_v62 }
  0xe5   :  { %v290_v34 = vadd.f32 %v2264_v22, %v289_v27 }
  0xe7   :  { %v2782_v44 = vmax.f32 %v290_v34, 0.0 }
  0xe9   :  { %v333_v56 = vmul.f32 %v2782_v44, %v2782_v44  ;;  %v316_v60 = vsel %vm255_vm0, %v2782_v44, 0.0 }
  0xea   :  { %v317_v5 = vadd.f32 %v316_v60, %v315_v63 }
  0xeb   :  { %v345_v1 = vsel %vm255_vm0, %v333_v56, 0.0 }
  0xec   :  { %v292_v41 = vpop.f32.mrf.mxu0  ;;  %v346_v8 = vadd.f32 %v345_v1, %v344_v4 }
  0xed   :  { %v293_v45 = vadd.f32 %v2264_v22, %v292_v41 }
  0xef   :  { %v2790_v51 = vmax.f32 %v293_v45, 0.0 }
  0xf1   :  { %v334_v61 = vmul.f32 %v2790_v51, %v2790_v51  ;;  %v318_v2 = vsel %vm255_vm0, %v2790_v51, 0.0 }
  0xf2   :  { %v319_v9 = vadd.f32 %v318_v2, %v317_v5 }
  0xf3   :  { %v347_v6 = vsel %vm255_vm0, %v334_v61, 0.0 }
  0xf4   :  { %v294_v0 = vpop.f32.mrf.mxu0  ;;  %v348_v12 = vadd.f32 %v347_v6, %v346_v8 }
  0xf5   :  { %v295_v3 = vadd.f32 %v2264_v22, %v294_v0 }
  0xf7   :  { %v304_v7 = vmax.f32 %v295_v3, 0.0 }
  0xf9   :  { %v320_v10 = vsel %vm255_vm0, %v304_v7, 0.0  ;;  %v335_v11 = vmul.f32 %v304_v7, %v304_v7 }
  0xfa   :  { %v321_v13 = vadd.f32 %v320_v10, %v319_v9 }
  0xfb   :  { %v349_v14 = vsel %vm255_vm0, %v335_v11, 0.0 }
  0xfc   :  { %v322_v15 = vrot.slane %v321_v13, 4  ;;  %v350_v16 = vadd.f32 %v349_v14, %v348_v12 }
  0xfe   :  { %v323_v17 = vadd.f32 %v322_v15, %v321_v13  ;;  %v351_v18 = vrot.slane %v350_v16, 4 }
 0x100   :  { %v324_v19 = vrot.slane %v323_v17, 2  ;;  %v352_v20 = vadd.f32 %v351_v18, %v350_v16 }
 0x102   :  { %v325_v21 = vadd.f32 %v324_v19, %v323_v17  ;;  %v353_v22 = vrot.slane %v352_v20, 2  ;;  %v410_v17 = vlaneseq }
 0x104   :  { %v326_v23 = vrot.slane %v325_v21, 1  ;;  %v354_v24 = vadd.f32 %v353_v22, %v352_v20 }
 0x106   :  { %v327_v25 = vadd.f32 %v326_v23, %v325_v21  ;;  %v355_v27 = vrot.slane %v354_v24, 1 }
 0x108   :  { %v356_v28 = vadd.f32 %v355_v27, %v354_v24  ;;  %v357_v31 = vmul.f32 0.015625, %v327_v25 }
 0x10a   :  { %v358_v32 = vmul.f32 0.015625, %v356_v28  ;;  %v359_v34 = vmul.f32 %v357_v31, %v357_v31  ;;  %v368_v45 = vsub.f32 %v304_v7, %v357_v31  ;;  %v361_v47 = vsub.f32 %v2759_v29, %v357_v31 }
 0x10b   :  { %v362_v48 = vsub.f32 %v2757_v26, %v357_v31  ;;  %v363_v49 = vsub.f32 %v2761_v30, %v357_v31  ;;  %v364_v52 = vsub.f32 %v2765_v33, %v357_v31  ;;  %v367_v53 = vsub.f32 %v2790_v51, %v357_v31 }
 0x10c   :  { %v360_v35 = vsub.f32 %v358_v32, %v359_v34  ;;  %v365_v7 = vsub.f32 %v2773_v38, %v357_v31  ;;  %v366_v8 = vsub.f32 %v2782_v44, %v357_v31  ;;  %v2845_v38 = vshrl.u32 %v410_v17, 7 }
 0x10e   :  { %v369_v36 = vadd.f32 1e-05, %v360_v35  ;;  %vm673_vm5 = vcmp.lt.s32.totalorder %v2845_v38, 2  ;;  %vm762_vm7 = vcmp.lt.s32.totalorder %v2845_v38, 6 }
 0x110   :  { %2279 = vrsqrt.f32 %v369_v36  ;;  %vm376_vm2 = vweird.f32 %v369_v36 }
 0x116   :  { %v2280_v37 = vpop.eup %2279 }
 0x117   :  { %v371_v39 = vmul.f32 %v2280_v37, %v369_v36  ;;  %vm377_vm1 = vweird.f32 %v2280_v37 }
 0x118   :  { %vm378_vm3 = vmor %vm376_vm2, %vm377_vm1 }
 0x119   :  { %v372_v40 = vmul.f32 %v2280_v37, %v371_v39  ;;  %v423_v39 = vand.u32 31, %v2845_v38 }
 0x11b   :  { %v373_v41 = vmul.f32 0.5, %v372_v40  ;;  %v515_v40 = vadd.s32 4294967294, %v423_v39 }
 0x11d   :  { %v374_v42 = vsub.f32 1.5, %v373_v41  ;;  %vm523_vm6 = vcmp.ge.s32.totalorder %v515_v40, 0 }
 0x11f   :  { %v375_v43 = vmul.f32 %v2280_v37, %v374_v42 }
 0x121   :  { %v379_v50 = vsel %vm378_vm3, %v2280_v37, %v375_v43  ;;  %vm1296_vm3 = vcmask 257152  }
 0x122   :  { %v387_v54 = vmul.f32 %v379_v50, %v368_v45  ;;  %v380_v56 = vmul.f32 %v379_v50, %v361_v47  ;;  %v381_v57 = vmul.f32 %v379_v50, %v362_v48  ;;  %v382_v58 = vmul.f32 %v379_v50, %v363_v49 }
 0x123   :  { %v383_v59 = vmul.f32 %v379_v50, %v364_v52  ;;  %v386_v60 = vmul.f32 %v379_v50, %v367_v53  ;;  %v384_v9 = vmul.f32 %v379_v50, %v365_v7  ;;  %v385_v10 = vmul.f32 %v379_v50, %v366_v8 }
 0x124   :  { %v398_v61 = vmul.f32 %v2265_v46, %v387_v54  ;;  %v391_v62 = vmul.f32 %v2265_v46, %v380_v56  ;;  %v392_v63 = vmul.f32 %v2265_v46, %v381_v57  ;;  %v393_v29 = vmul.f32 %v2265_v46, %v382_v58 }
 0x125   :  { %v394_v0 = vmul.f32 %v2265_v46, %v383_v59  ;;  %v397_v26 = vmul.f32 %v2265_v46, %v386_v60  ;;  %v395_v11 = vmul.f32 %v2265_v46, %v384_v9  ;;  %v396_v12 = vmul.f32 %v2265_v46, %v385_v10 }
 0x126   :  { %v2813_v1 = vadd.f32 %v2266_v55, %v398_v61  ;;  %v2815_v30 = vadd.f32 %v2266_v55, %v391_v62  ;;  %v2817_v33 = vadd.f32 %v2266_v55, %v392_v63  ;;  %v2819_v51 = vadd.f32 %v2266_v55, %v393_v29  ;;  %v2932_v63 = vld [vmem:[%s3643_s6] ss:$0 sm:$0xff] }
 0x127   :  { %v2821_v2 = vadd.f32 %v2266_v55, %v394_v0  ;;  %v2823_v3 = vadd.f32 %v2266_v55, %v397_v26  ;;  %v2836_v13 = vadd.f32 %v2266_v55, %v395_v11  ;;  %v2838_v14 = vadd.f32 %v2266_v55, %v396_v12 }
 0x128   :  { %v611_v4 = vpack.c.bf16 %v2817_v33, %v2815_v30  ;;  %v414_v46 = vadd.s32 24, %v2845_v38  ;;  %v2614_v47 = vmov 0.0   ;;  %v415_v50 = vadd.s32 32, %v2845_v38 }
 0x129   :  { %v612_v5 = vpack.c.bf16 %v2821_v2, %v2819_v51  ;;  %v614_v6 = vpack.c.bf16 %v2813_v1, %v2823_v3  ;;  %v613_v15 = vpack.c.bf16 %v2838_v14, %v2836_v13  ;;  %v2919_v48 = vsel %vm523_vm6, 1.0, %v2614_v47 }
 0x12a   :  { %2141 = vmatmul.msk.bf16.vlgmr.msrb.gmra.mxu0 %vm623_vm4, %v611_v4  ;;  %v444_v54 = vand.u32 31, %v414_v46  ;;  %v451_v60 = vand.u32 31, %v415_v50 }
 0x12b   :  { %2142 = vmatmul.msk.bf16.vlgmr.msra.gmra.mxu1 %vm623_vm4, %v612_v5  ;;  %2144 = vmatmul.msk.bf16.vlgmr.msra.gmra.mxu2 %vm623_vm4, %v614_v6 }
 0x12c   :  { %v566_v5 = vadd.s32 2, %v444_v54  ;;  %v519_v6 = vadd.s32 4294967294, %v451_v60 }
 0x12e   :  { %vm582_vm8 = vcmp.lt.s32.totalorder %v566_v5, 32  ;;  %vm527_vm9 = vcmp.ge.s32.totalorder %v519_v6, 0 }
 0x13b   :  { %2143 = vmatmul.msk.bf16.gmra.mxu1 %vm623_vm4, %v613_v15 }
 0x1a7   :  { %v645_v16 = vpop.f32.mrf.mxu0 }
 0x1a8   :  { %v650_v18 = vpop.f32.mrf.mxu1  ;;  %730 = vrot.lane.b32.xlu0 %v645_v16, %s2612_s1  ;;  %v665_v20 = vrot.slane %v645_v16, 6 }
 0x1a9   :  { %734 = vrot.lane.b32.xlu1 %v650_v18, %s2612_s1  ;;  %v667_v21 = vrot.slane %v650_v18, 6 }
 0x1ae   :  { %v2847_v44 = vpop.f32.mrf.mxu2 }
 0x1af   :  { %742 = vrot.lane.b32.xlu2 %v2847_v44, %s2612_s1  ;;  %v647_v19 = vpop.f32.mrf.mxu0 }
 0x1b0   :  { %v666_v22 = vrot.slane %v647_v19, 6  ;;  %v652_v23 = vpop.f32.mrf.mxu1  ;;  %732 = vrot.lane.b32.xlu0 %v647_v19, %s2612_s1 }
 0x1b1   :  { %v668_v24 = vrot.slane %v652_v23, 6  ;;  %698 = vrot.lane.b32.xlu1 %v645_v16, %s2613_s23 }
 0x1b2   :  { %v680_v25 = vsel %vm673_vm5, %v665_v20, %v666_v22  ;;  %v2858_v27 = vsel %vm673_vm5, %v666_v22, %v667_v21 }
 0x1b3   :  { %v2862_v28 = vsel %vm673_vm5, %v667_v21, %v668_v24 }
 0x1b6   :  { %v2885_v36 = vpop.f32.mrf.mxu2 }
 0x1b7   :  { %700 = vrot.lane.b32.xlu2 %v647_v19, %s2613_s23  ;;  %v672_v43 = vrot.slane %v2885_v36, 6 }
 0x1b8   :  { %v2865_v31 = vpop.f32.mrf.mxu1 }
 0x1b9   :  { %v669_v32 = vrot.slane %v2865_v31, 6  ;;  %702 = vrot.lane.b32.xlu1 %v650_v18, %s2613_s23  ;;  %738 = vrot.lane.b32.xlu0 %v2865_v31, %s2612_s1  ;;  %v681_v49 = vsel %vm673_vm5, %v672_v43, %v665_v20 }
 0x1ba   :  { %v682_v52 = vmul.f32 %v2919_v48, %v681_v49 }
 0x1bb   :  { %v2875_v34 = vsel %vm673_vm5, %v668_v24, %v669_v32 }
 0x1bf   :  { %736 = vrot.lane.b32.xlu2 %v652_v23, %s2612_s1 }
 0x1c0   :  { %v2878_v35 = vpop.f32.mrf.mxu1 }
 0x1c1   :  { %706 = vrot.lane.b32.xlu1 %v2865_v31, %s2613_s23  ;;  %740 = vrot.lane.b32.xlu0 %v2878_v35, %s2612_s1  ;;  %v670_v5 = vrot.slane %v2878_v35, 6 }
 0x1c7   :  { %704 = vrot.lane.b32.xlu2 %v652_v23, %s2613_s23  ;;  %v2956_v23 = vsel %vm582_vm8, 1.0, %v2614_v47  ;;  %vm1670_vm8 = vcmask 388352  }
 0x1c9   :  { %744 = vrot.lane.b32.xlu1 %v2885_v36, %s2612_s1  ;;  %708 = vrot.lane.b32.xlu0 %v2878_v35, %s2613_s23 }
 0x1cf   :  { %710 = vrot.lane.b32.xlu2 %v2847_v44, %s2613_s23 }
 0x1d1   :  { %931 = vrot.lane.b32.xlu1 %v2815_v30, %s2613_s23  ;;  %712 = vrot.lane.b32.xlu0 %v2885_v36, %s2613_s23 }
 0x1d7   :  { %933 = vrot.lane.b32.xlu2 %v2817_v33, %s2613_s23 }
 0x1d9   :  { %937 = vrot.lane.b32.xlu1 %v2821_v2, %s2613_s23  ;;  %935 = vrot.lane.b32.xlu0 %v2819_v51, %s2613_s23 }
 0x1df   :  { %939 = vrot.lane.b32.xlu2 %v2836_v13, %s2613_s23 }
 0x1e1   :  { %943 = vrot.lane.b32.xlu1 %v2823_v3, %s2613_s23  ;;  %941 = vrot.lane.b32.xlu0 %v2838_v14, %s2613_s23 }
 0x1e7   :  { %945 = vrot.lane.b32.xlu2 %v2813_v1, %s2613_s23 }
 0x209   :  { %v2911_v37 = vpop.permute.xlu2 %742 }
 0x20a   :  { %v760_v35 = vrot.slane %v2911_v37, 2 }
 0x211   :  { %v701_v41 = vpop.permute.xlu2 %700 }
 0x212   :  { %v723_v61 = vadd.f32 %v701_v41, %v680_v25 }
 0x219   :  { %v737_v55 = vpop.permute.xlu2 %736 }
 0x21a   :  { %v2914_v42 = vpop.permute.xlu0 %730  ;;  %v757_v11 = vrot.slane %v737_v55, 2  ;;  %v418_v55 = vadd.s32 56, %v2845_v38 }
 0x21b   :  { %v735_v45 = vpop.permute.xlu1 %734  ;;  %v754_v57 = vrot.slane %v2914_v42, 2 }
 0x21c   :  { %v756_v56 = vrot.slane %v735_v45, 2 }
 0x21e   :  { %v767_v40 = vsel %vm762_vm7, %v756_v56, %v757_v11 }
 0x221   :  { %v705_v20 = vpop.permute.xlu2 %704 }
 0x222   :  { %v733_v53 = vpop.permute.xlu0 %732  ;;  %v725_v49 = vadd.f32 %v705_v20, %v2862_v28 }
 0x223   :  { %v699_v58 = vpop.permute.xlu1 %698  ;;  %v755_v59 = vrot.slane %v733_v53, 2 }
 0x224   :  { %v722_v62 = vadd.f32 %v699_v58, %v682_v52 }
 0x225   :  { %v768_v29 = vsel %vm762_vm7, %v755_v59, %v756_v56  ;;  %v769_v0 = vsel %vm762_vm7, %v754_v57, %v755_v59 }
 0x226   :  { %v779_v26 = vadd.f32 %v769_v0, %v722_v62  ;;  %v780_v4 = vadd.f32 %v768_v29, %v723_v61 }
 0x228   :  { %v789_v7 = vadd.f32 %v2932_v63, %v779_v26  ;;  %v790_v8 = vadd.f32 %v2932_v63, %v780_v4  ;;  %v472_v4 = vand.u32 31, %v418_v55 }
 0x22a   :  { %v2942_v9 = vmax.f32 %v789_v7, 0.0  ;;  %v2944_v10 = vmax.f32 %v790_v8, 0.0  ;;  %v570_v20 = vadd.s32 2, %v472_v4 }
 0x22b   :  { %v703_v12 = vpop.permute.xlu1 %702  ;;  %v739_v15 = vpop.permute.xlu0 %738 }
 0x22c   :  { %v807_v16 = vsel %vm623_vm4, %v2942_v9, 0.0  ;;  %v808_v17 = vsel %vm623_vm4, %v2944_v10, 0.0  ;;  %v828_v18 = vmul.f32 %v2942_v9, %v2942_v9  ;;  %v829_v19 = vmul.f32 %v2944_v10, %v2944_v10 }
 0x22d   :  { %v724_v21 = vadd.f32 %v703_v12, %v2858_v27  ;;  %v809_v22 = vadd.f32 %v808_v17, %v807_v16  ;;  %v758_v24 = vrot.slane %v739_v15, 2  ;;  %v2966_v27 = vsel %vm527_vm9, 1.0, %v2614_v47 }
 0x22e   :  { %v836_v25 = vsel %vm623_vm4, %v828_v18, 0.0  ;;  %v837_v39 = vsel %vm623_vm4, %v829_v19, 0.0  ;;  %v686_v54 = vmul.f32 %v2966_v27, %v2875_v34  ;;  %v671_v17 = vrot.slane %v2847_v44, 6  ;;  %v711_v18 = vpop.permute.xlu2 %710 }
 0x22f   :  { %v781_v41 = vadd.f32 %v767_v40, %v724_v21  ;;  %v838_v45 = vadd.f32 %v837_v39, %v836_v25  ;;  %v766_v46 = vsel %vm762_vm7, %v757_v11, %v758_v24  ;;  %vm586_vm10 = vcmp.lt.s32.totalorder %v570_v20, 32 }
 0x230   :  { %v774_v50 = vmul.f32 %v2956_v23, %v766_v46  ;;  %v675_v40 = vsel %vm673_vm5, %v670_v5, %v671_v17  ;;  %vm1687_vm9 = vcmask 519552  }
 0x231   :  { %v791_v52 = vadd.f32 %v2932_v63, %v781_v41 }
 0x232   :  { %v782_v53 = vadd.f32 %v774_v50, %v725_v49 }
 0x233   :  { %v2974_v56 = vmax.f32 %v791_v52, 0.0  ;;  %v707_v58 = vpop.permute.xlu1 %706  ;;  %v741_v59 = vpop.permute.xlu0 %740 }
 0x234   :  { %v792_v60 = vadd.f32 %v2932_v63, %v782_v53  ;;  %v726_v61 = vadd.f32 %v707_v58, %v686_v54  ;;  %v759_v62 = vrot.slane %v741_v59, 2 }
 0x235   :  { %v810_v28 = vsel %vm623_vm4, %v2974_v56, 0.0  ;;  %v830_v29 = vmul.f32 %v2974_v56, %v2974_v56 }
 0x236   :  { %v811_v0 = vadd.f32 %v810_v28, %v809_v22  ;;  %v2981_v26 = vmax.f32 %v792_v60, 0.0  ;;  %v765_v34 = vsel %vm762_vm7, %v758_v24, %v759_v62  ;;  %v676_v24 = vsel %vm673_vm5, %v669_v32, %v670_v5 }
 0x237   :  { %v839_v6 = vsel %vm623_vm4, %v830_v29, 0.0  ;;  %v783_v7 = vadd.f32 %v765_v34, %v726_v61  ;;  %v764_v31 = vsel %vm762_vm7, %v759_v62, %v760_v35  ;;  %v3019_v60 = vsel %vm586_vm10, 1.0, %v2614_v47 }
 0x238   :  { %v840_v8 = vadd.f32 %v839_v6, %v838_v45  ;;  %v812_v11 = vsel %vm623_vm4, %v2981_v26, 0.0  ;;  %v831_v12 = vmul.f32 %v2981_v26, %v2981_v26  ;;  %v728_v45 = vadd.f32 %v711_v18, %v675_v40 }
 0x239   :  { %v793_v15 = vadd.f32 %v2932_v63, %v783_v7  ;;  %v813_v16 = vadd.f32 %v812_v11, %v811_v0  ;;  %v674_v28 = vsel %vm673_vm5, %v671_v17, %v672_v43 }
 0x23a   :  { %v841_v19 = vsel %vm623_vm4, %v831_v12, 0.0 }
 0x23b   :  { %v2995_v21 = vmax.f32 %v793_v15, 0.0  ;;  %v745_v22 = vpop.permute.xlu1 %744  ;;  %v709_v25 = vpop.permute.xlu0 %708  ;;  %v842_v39 = vadd.f32 %v841_v19, %v840_v8 }
 0x23c   :  { %v761_v44 = vrot.slane %v745_v22, 2  ;;  %v727_v41 = vadd.f32 %v709_v25, %v676_v24 }
 0x23d   :  { %v814_v46 = vsel %vm623_vm4, %v2995_v21, 0.0  ;;  %v832_v37 = vmul.f32 %v2995_v21, %v2995_v21 }
 0x23e   :  { %v763_v32 = vsel %vm762_vm7, %v760_v35, %v761_v44  ;;  %v784_v49 = vadd.f32 %v764_v31, %v727_v41  ;;  %v815_v50 = vadd.f32 %v814_v46, %v813_v16  ;;  %v770_v58 = vsel %vm762_vm7, %v761_v44, %v754_v57 }
 0x23f   :  { %v843_v52 = vsel %vm623_vm4, %v832_v37, 0.0  ;;  %v785_v53 = vadd.f32 %v763_v32, %v728_v45  ;;  %v778_v0 = vmul.f32 %v3019_v60, %v770_v58 }
 0x240   :  { %v794_v54 = vadd.f32 %v2932_v63, %v784_v49  ;;  %v844_v55 = vadd.f32 %v843_v52, %v842_v39 }
 0x241   :  { %v795_v59 = vadd.f32 %v2932_v63, %v785_v53  ;;  %v2225_v53 = vld [vmem:[#allocation11 + $0x8] sm:$0xff] }
 0x242   :  { %v3021_v61 = vmax.f32 %v794_v54, 0.0  ;;  %995 = vmatpush.bf16.msrb.mxu2 %v2225_v53 }
 0x243   :  { %v3023_v62 = vmax.f32 %v795_v59, 0.0  ;;  %v713_v29 = vpop.permute.xlu0 %712 }
 0x244   :  { %v816_v42 = vsel %vm623_vm4, %v3021_v61, 0.0  ;;  %v833_v57 = vmul.f32 %v3021_v61, %v3021_v61  ;;  %v729_v47 = vadd.f32 %v713_v29, %v674_v28 }
 0x245   :  { %v818_v34 = vsel %vm623_vm4, %v3023_v62, 0.0  ;;  %v834_v4 = vmul.f32 %v3023_v62, %v3023_v62  ;;  %v817_v36 = vadd.f32 %v816_v42, %v815_v50 }
 0x246   :  { %v845_v5 = vsel %vm623_vm4, %v833_v57, 0.0  ;;  %v786_v43 = vadd.f32 %v778_v0, %v729_v47  ;;  %v934_v0 = vpop.permute.xlu2 %933  ;;  %v932_v47 = vpop.permute.xlu1 %931 }
 0x247   :  { %v847_v6 = vsel %vm623_vm4, %v834_v4, 0.0  ;;  %v846_v7 = vadd.f32 %v845_v5, %v844_v55  ;;  %v819_v8 = vadd.f32 %v818_v34, %v817_v36 }
 0x248   :  { %v796_v11 = vadd.f32 %v2932_v63, %v786_v43 }
 0x249   :  { %v848_v12 = vadd.f32 %v847_v6, %v846_v7 }
 0x24a   :  { %v804_v15 = vmax.f32 %v796_v11, 0.0 }
 0x24b   :  { %v936_v43 = vpop.permute.xlu0 %935 }
 0x24c   :  { %v820_v16 = vsel %vm623_vm4, %v804_v15, 0.0  ;;  %v835_v17 = vmul.f32 %v804_v15, %v804_v15 }
 0x24d   :  { %v821_v18 = vadd.f32 %v820_v16, %v819_v8 }
 0x24e   :  { %v849_v19 = vsel %vm623_vm4, %v835_v17, 0.0 }
 0x24f   :  { %v822_v20 = vrot.slane %v821_v18, 4  ;;  %v850_v35 = vadd.f32 %v849_v19, %v848_v12 }
 0x251   :  { %v823_v22 = vadd.f32 %v822_v20, %v821_v18  ;;  %v851_v24 = vrot.slane %v850_v35, 4 }
 0x253   :  { %v824_v25 = vrot.slane %v823_v22, 2  ;;  %v852_v39 = vadd.f32 %v851_v24, %v850_v35 }
 0x255   :  { %v825_v40 = vadd.f32 %v824_v25, %v823_v22  ;;  %v853_v44 = vrot.slane %v852_v39, 2 }
 0x257   :  { %v826_v41 = vrot.slane %v825_v40, 1  ;;  %v854_v45 = vadd.f32 %v853_v44, %v852_v39 }
 0x259   :  { %v827_v46 = vadd.f32 %v826_v41, %v825_v40  ;;  %v855_v63 = vrot.slane %v854_v45, 1 }
 0x25b   :  { %v856_v37 = vadd.f32 %v855_v63, %v854_v45  ;;  %v857_v31 = vmul.f32 0.015625, %v827_v46 }
 0x25d   :  { %v858_v32 = vmul.f32 0.015625, %v856_v37  ;;  %v859_v49 = vmul.f32 %v857_v31, %v857_v31  ;;  %v868_v50 = vsub.f32 %v804_v15, %v857_v31  ;;  %v864_v52 = vsub.f32 %v2981_v26, %v857_v31 }
 0x25e   :  { %v863_v54 = vsub.f32 %v2974_v56, %v857_v31  ;;  %v867_v55 = vsub.f32 %v3023_v62, %v857_v31  ;;  %v865_v58 = vsub.f32 %v2995_v21, %v857_v31  ;;  %v866_v59 = vsub.f32 %v3021_v61, %v857_v31  ;;  %v940_v62 = vpop.permute.xlu2 %939  ;;  %v938_v21 = vpop.permute.xlu1 %937  ;;  %v2268_v61 = vld [vmem:[#allocation12] ss:$0 sm:$0xff] }
 0x25f   :  { %v860_v28 = vsub.f32 %v858_v32, %v859_v49  ;;  %v861_v29 = vsub.f32 %v2942_v9, %v857_v31  ;;  %v862_v42 = vsub.f32 %v2944_v10, %v857_v31  ;;  %v2269_v10 = vld [vmem:[#allocation14] ss:$0 sm:$0xff] }
 0x261   :  { %v869_v57 = vadd.f32 1e-05, %v860_v28 }
 0x263   :  { %2281 = vrsqrt.f32 %v869_v57  ;;  %vm876_vm12 = vweird.f32 %v869_v57 }
 0x266   :  { %v946_v32 = vpop.permute.xlu2 %945 }
 0x269   :  { %v2282_v26 = vpop.eup %2281 }
 0x26a   :  { %v871_v34 = vmul.f32 %v2282_v26, %v869_v57  ;;  %vm877_vm11 = vweird.f32 %v2282_v26 }
 0x26b   :  { %vm878_vm13 = vmor %vm876_vm12, %vm877_vm11 }
 0x26c   :  { %v872_v4 = vmul.f32 %v2282_v26, %v871_v34 }
 0x26e   :  { %v873_v56 = vmul.f32 0.5, %v872_v4 }
 0x270   :  { %v874_v36 = vsub.f32 1.5, %v873_v56 }
 0x272   :  { %v875_v5 = vmul.f32 %v2282_v26, %v874_v36 }
 0x274   :  { %v879_v9 = vsel %vm878_vm13, %v2282_v26, %v875_v5 }
 0x275   :  { %v883_v6 = vmul.f32 %v879_v9, %v864_v52  ;;  %v882_v7 = vmul.f32 %v879_v9, %v863_v54  ;;  %v886_v8 = vmul.f32 %v879_v9, %v867_v55  ;;  %v887_v11 = vmul.f32 %v879_v9, %v868_v50  ;;  %v944_v54 = vpop.permute.xlu1 %943 }
 0x276   :  { %v884_v12 = vmul.f32 %v879_v9, %v865_v58  ;;  %v885_v15 = vmul.f32 %v879_v9, %v866_v59  ;;  %v880_v16 = vmul.f32 %v879_v9, %v861_v29  ;;  %v881_v17 = vmul.f32 %v879_v9, %v862_v42  ;;  %v942_v29 = vpop.permute.xlu0 %941 }
 0x277   :  { %v892_v18 = vmul.f32 %v2268_v61, %v883_v6  ;;  %v891_v19 = vmul.f32 %v2268_v61, %v882_v7  ;;  %v895_v20 = vmul.f32 %v2268_v61, %v886_v8  ;;  %v896_v35 = vmul.f32 %v2268_v61, %v887_v11 }
 0x278   :  { %v893_v22 = vmul.f32 %v2268_v61, %v884_v12  ;;  %v894_v24 = vmul.f32 %v2268_v61, %v885_v15  ;;  %v889_v25 = vmul.f32 %v2268_v61, %v880_v16  ;;  %v890_v39 = vmul.f32 %v2268_v61, %v881_v17 }
 0x279   :  { %v901_v40 = vadd.f32 %v2269_v10, %v892_v18  ;;  %v900_v44 = vadd.f32 %v2269_v10, %v891_v19  ;;  %v904_v41 = vadd.f32 %v2269_v10, %v895_v20  ;;  %v905_v45 = vadd.f32 %v2269_v10, %v896_v35 }
 0x27a   :  { %v902_v46 = vadd.f32 %v2269_v10, %v893_v22  ;;  %v903_v63 = vadd.f32 %v2269_v10, %v894_v24  ;;  %v898_v37 = vadd.f32 %v2269_v10, %v889_v25  ;;  %v899_v31 = vadd.f32 %v2269_v10, %v890_v39 }
 0x27b   :  { %v909_v49 = vpack.c.bf16 %v901_v40, %v901_v40  ;;  %v958_v50 = vadd.f32 %v938_v21, %v901_v40  ;;  %v908_v52 = vpack.c.bf16 %v900_v44, %v900_v44  ;;  %v957_v53 = vadd.f32 %v936_v43, %v900_v44 }
 0x27c   :  { %v912_v55 = vpack.c.bf16 %v904_v41, %v904_v41  ;;  %v961_v58 = vadd.f32 %v944_v54, %v904_v41  ;;  %v962_v59 = vadd.f32 %v946_v32, %v905_v45  ;;  %v910_v42 = vpack.c.bf16 %v902_v46, %v902_v46 }
 0x27d   :  { %v964_v28 = vpack.c.bf16 %v958_v50, %v957_v53  ;;  %v911_v57 = vpack.c.bf16 %v903_v63, %v903_v63  ;;  %v959_v26 = vadd.f32 %v940_v62, %v902_v46  ;;  %917 = vst.msk [vmem:[#allocation2 + $0x8] sm:$0xf] %vm914_vm14, %v908_v52  ;;  %v960_v4 = vadd.f32 %v942_v29, %v903_v63  ;;  %v3137_v52 = vld [vmem:[%s3643_s6 + $0x1] ss:$0 sm:$0xff] }
 0x27e   :  { %v966_v34 = vpack.c.bf16 %v962_v59, %v961_v58  ;;  %v955_v56 = vadd.f32 %v932_v47, %v898_v37  ;;  %v956_v36 = vadd.f32 %v934_v0, %v899_v31  ;;  %918 = vst.msk [vmem:[#allocation2 + $0xc] sm:$0xf] %vm914_vm14, %v909_v49  ;;  %v913_v21 = vpack.c.bf16 %v905_v45, %v905_v45 }
 0x27f   :  { %v907_v5 = vpack.c.bf16 %v899_v31, %v899_v31  ;;  %919 = vst.msk [vmem:[#allocation2 + $0x10] sm:$0xf] %vm914_vm14, %v910_v42  ;;  %v965_v61 = vpack.c.bf16 %v960_v4, %v959_v26  ;;  %v906_v9 = vpack.c.bf16 %v898_v37, %v898_v37 }
 0x280   :  { %v963_v43 = vpack.c.bf16 %v956_v36, %v955_v56  ;;  %920 = vst.msk [vmem:[#allocation2 + $0x14] sm:$0xf] %vm914_vm14, %v911_v57 }
 0x281   :  { %916 = vst.msk [vmem:[#allocation2 + $0x4] sm:$0xf] %vm914_vm14, %v907_v5 }
 0x282   :  { %2149 = vmatmul.msk.bf16.vlgmr.msrb.gmra.mxu2 %vm623_vm4, %v963_v43  ;;  %921 = vst.msk [vmem:[#allocation2 + $0x18] sm:$0xf] %vm914_vm14, %v912_v55 }
 0x283   :  { %922 = vst.msk [vmem:[#allocation2 + $0x1c] sm:$0xf] %vm914_vm14, %v913_v21 }
 0x284   :  { %915 = vst.msk [vmem:[#allocation2] sm:$0xf] %vm914_vm14, %v906_v9  ;;  %vm1963_vm14 = vcmask 1041409  }
 0x292   :  { %2150 = vmatmul.msk.bf16.gmra.mxu2 %vm623_vm4, %v964_v28 }
 0x2a2   :  { %2151 = vmatmul.msk.bf16.gmra.mxu2 %vm623_vm4, %v965_v61 }
 0x2b2   :  { %2152 = vmatmul.msk.bf16.gmra.mxu2 %vm623_vm4, %v966_v34 }
 0x305   :  { %v997_v0 = vpop.f32.mrf.mxu2 }
 0x306   :  { %1081 = vrot.lane.b32.xlu0 %v997_v0, %s2612_s1  ;;  %v1017_v62 = vrot.slane %v997_v0, 6 }
 0x30d   :  { %v999_v47 = vpop.f32.mrf.mxu2 }
 0x30e   :  { %v1018_v10 = vrot.slane %v999_v47, 6  ;;  %1049 = vrot.lane.b32.xlu0 %v997_v0, %s2613_s23  ;;  %1083 = vrot.lane.b32.xlu1 %v999_v47, %s2612_s1 }
 0x310   :  { %v1031_v6 = vsel %vm673_vm5, %v1017_v62, %v1018_v10 }
 0x315   :  { %v1002_v7 = vpop.f32.mrf.mxu2 }
 0x316   :  { %v1019_v8 = vrot.slane %v1002_v7, 6  ;;  %1051 = vrot.lane.b32.xlu1 %v999_v47, %s2613_s23  ;;  %1085 = vrot.lane.b32.xlu2 %v1002_v7, %s2612_s1 }
 0x318   :  { %v1030_v11 = vsel %vm673_vm5, %v1018_v10, %v1019_v8 }
 0x31d   :  { %v1004_v12 = vpop.f32.mrf.mxu2 }
 0x31e   :  { %v1020_v15 = vrot.slane %v1004_v12, 6  ;;  %1053 = vrot.lane.b32.xlu1 %v1002_v7, %s2613_s23  ;;  %1087 = vrot.lane.b32.xlu2 %v1004_v12, %s2612_s1 }
 0x320   :  { %v3075_v16 = vsel %vm673_vm5, %v1019_v8, %v1020_v15 }
 0x325   :  { %v1007_v17 = vpop.f32.mrf.mxu2 }
 0x326   :  { %v1021_v18 = vrot.slane %v1007_v17, 6  ;;  %1055 = vrot.lane.b32.xlu2 %v1004_v12, %s2613_s23  ;;  %1057 = vrot.lane.b32.xlu1 %v1007_v17, %s2613_s23 }
 0x327   :  { %1089 = vrot.lane.b32.xlu0 %v1007_v17, %s2612_s1 }
 0x328   :  { %v3082_v19 = vsel %vm673_vm5, %v1020_v15, %v1021_v18 }
 0x32d   :  { %v1009_v20 = vpop.f32.mrf.mxu2 }
 0x32e   :  { %v1022_v35 = vrot.slane %v1009_v20, 6 }
 0x32f   :  { %1091 = vrot.lane.b32.xlu0 %v1009_v20, %s2612_s1 }
 0x330   :  { %v3087_v22 = vsel %vm673_vm5, %v1021_v18, %v1022_v35 }
 0x335   :  { %v3089_v24 = vpop.f32.mrf.mxu2 }
 0x336   :  { %v1023_v25 = vrot.slane %v3089_v24, 6  ;;  %1093 = vrot.lane.b32.xlu2 %v3089_v24, %s2612_s1 }
 0x337   :  { %1059 = vrot.lane.b32.xlu0 %v1009_v20, %s2613_s23 }
 0x338   :  { %v3099_v39 = vsel %vm673_vm5, %v1022_v35, %v1023_v25 }
 0x33d   :  { %v3101_v40 = vpop.f32.mrf.mxu2 }
 0x33e   :  { %1061 = vrot.lane.b32.xlu2 %v3089_v24, %s2613_s23  ;;  %1095 = vrot.lane.b32.xlu1 %v3101_v40, %s2612_s1  ;;  %v1024_v44 = vrot.slane %v3101_v40, 6 }
 0x33f   :  { %1063 = vrot.lane.b32.xlu0 %v3101_v40, %s2613_s23 }
 0x340   :  { %v1032_v45 = vsel %vm673_vm5, %v1024_v44, %v1017_v62 }
 0x341   :  { %v1033_v46 = vmul.f32 %v2919_v48, %v1032_v45 }
 0x346   :  { %1307 = vrot.lane.b32.xlu2 %v2817_v33, %s2612_s1  ;;  %1305 = vrot.lane.b32.xlu1 %v2815_v30, %s2612_s1 }
 0x347   :  { %1309 = vrot.lane.b32.xlu0 %v2819_v51, %s2612_s1 }
 0x34e   :  { %1313 = vrot.lane.b32.xlu2 %v2836_v13, %s2612_s1  ;;  %1311 = vrot.lane.b32.xlu1 %v2821_v2, %s2612_s1 }
 0x34f   :  { %1315 = vrot.lane.b32.xlu0 %v2838_v14, %s2612_s1 }
 0x356   :  { %1319 = vrot.lane.b32.xlu2 %v2813_v1, %s2612_s1  ;;  %1317 = vrot.lane.b32.xlu1 %v2823_v3, %s2612_s1 }
 0x370   :  { %v1086_v31 = vpop.permute.xlu2 %1085 }
 0x371   :  { %v1107_v58 = vrot.slane %v1086_v31, 2 }
 0x378   :  { %v3126_v41 = vpop.permute.xlu0 %1081  ;;  %v1088_v42 = vpop.permute.xlu2 %1087 }
 0x379   :  { %v1105_v32 = vrot.slane %v3126_v41, 2  ;;  %v1108_v4 = vrot.slane %v1088_v42, 2 }
 0x37b   :  { %v1117_v47 = vsel %vm762_vm7, %v1107_v58, %v1108_v4 }
 0x380   :  { %v1050_v63 = vpop.permute.xlu0 %1049  ;;  %v1084_v37 = vpop.permute.xlu1 %1083 }
 0x381   :  { %v1073_v49 = vadd.f32 %v1050_v63, %v1033_v46  ;;  %v1106_v50 = vrot.slane %v1084_v37, 2  ;;  %v1056_v18 = vpop.permute.xlu2 %1055 }
 0x382   :  { %v1076_v37 = vadd.f32 %v1056_v18, %v3075_v16 }
 0x383   :  { %v1119_v53 = vsel %vm762_vm7, %v1105_v32, %v1106_v50  ;;  %v1118_v29 = vsel %vm762_vm7, %v1106_v50, %v1107_v58 }
 0x384   :  { %v1129_v54 = vadd.f32 %v1119_v53, %v1073_v49  ;;  %v1037_v53 = vmul.f32 %v2966_v27, %v3082_v19 }
 0x386   :  { %v1139_v55 = vadd.f32 %v3137_v52, %v1129_v54 }
 0x388   :  { %v1052_v59 = vpop.permute.xlu1 %1051  ;;  %v3146_v57 = vmax.f32 %v1139_v55, 0.0 }
 0x389   :  { %v1074_v28 = vadd.f32 %v1052_v59, %v1031_v6 }
 0x38a   :  { %v1178_v56 = vmul.f32 %v3146_v57, %v3146_v57  ;;  %v1157_v5 = vsel %vm623_vm4, %v3146_v57, 0.0 }
 0x38b   :  { %v1130_v26 = vadd.f32 %v1118_v29, %v1074_v28 }
 0x38c   :  { %v1186_v62 = vsel %vm623_vm4, %v1178_v56, 0.0 }
 0x38d   :  { %v1140_v34 = vadd.f32 %v3137_v52, %v1130_v26 }
 0x38f   :  { %v3151_v36 = vmax.f32 %v1140_v34, 0.0 }
 0x390   :  { %v1054_v21 = vpop.permute.xlu1 %1053  ;;  %v1094_v42 = vpop.permute.xlu2 %1093 }
 0x391   :  { %v1158_v61 = vsel %vm623_vm4, %v3151_v36, 0.0  ;;  %v1179_v43 = vmul.f32 %v3151_v36, %v3151_v36  ;;  %v1075_v9 = vadd.f32 %v1054_v21, %v1030_v11 }
 0x392   :  { %v1159_v0 = vadd.f32 %v1158_v61, %v1157_v5  ;;  %v1111_v5 = vrot.slane %v1094_v42, 2 }
 0x393   :  { %v1187_v10 = vsel %vm623_vm4, %v1179_v43, 0.0  ;;  %v1131_v6 = vadd.f32 %v1117_v47, %v1075_v9 }
 0x394   :  { %v1188_v7 = vadd.f32 %v1187_v10, %v1186_v62 }
 0x395   :  { %v1141_v8 = vadd.f32 %v3137_v52, %v1131_v6 }
 0x397   :  { %v3164_v12 = vmax.f32 %v1141_v8, 0.0 }
 0x398   :  { %v1058_v50 = vpop.permute.xlu1 %1057 }
 0x399   :  { %v1160_v15 = vsel %vm623_vm4, %v3164_v12, 0.0  ;;  %v1180_v11 = vmul.f32 %v3164_v12, %v3164_v12  ;;  %v1090_v17 = vpop.permute.xlu0 %1089  ;;  %v1077_v59 = vadd.f32 %v1058_v50, %v1037_v53 }
 0x39a   :  { %v1161_v20 = vadd.f32 %v1160_v15, %v1159_v0  ;;  %v1109_v35 = vrot.slane %v1090_v17, 2 }
 0x39b   :  { %v1189_v45 = vsel %vm623_vm4, %v1180_v11, 0.0  ;;  %v1062_v11 = vpop.permute.xlu2 %1061 }
 0x39c   :  { %v1190_v46 = vadd.f32 %v1189_v45, %v1188_v7  ;;  %v1116_v63 = vsel %vm762_vm7, %v1108_v4, %v1109_v35 }
 0x39d   :  { %v1124_v31 = vmul.f32 %v2956_v23, %v1116_v63 }
 0x39f   :  { %v1132_v49 = vadd.f32 %v1124_v31, %v1076_v37  ;;  %v1025_v37 = vsel %vm673_vm5, %v1023_v25, %v1024_v44 }
 0x3a1   :  { %v1142_v54 = vadd.f32 %v3137_v52, %v1132_v49  ;;  %v1092_v55 = vpop.permute.xlu0 %1091 }
 0x3a2   :  { %v1110_v58 = vrot.slane %v1092_v55, 2 }
 0x3a3   :  { %v3178_v28 = vmax.f32 %v1142_v54, 0.0 }
 0x3a4   :  { %v1115_v29 = vsel %vm762_vm7, %v1109_v35, %v1110_v58  ;;  %v1114_v62 = vsel %vm762_vm7, %v1110_v58, %v1111_v5  ;;  %v1079_v35 = vadd.f32 %v1062_v11, %v3099_v39 }
 0x3a5   :  { %v1162_v16 = vsel %vm623_vm4, %v3178_v28, 0.0  ;;  %v1181_v26 = vmul.f32 %v3178_v28, %v3178_v28  ;;  %v1133_v34 = vadd.f32 %v1115_v29, %v1077_v59 }
 0x3a6   :  { %v1163_v4 = vadd.f32 %v1162_v16, %v1161_v20 }
 0x3a7   :  { %v1191_v19 = vsel %vm623_vm4, %v1181_v26, 0.0  ;;  %v1143_v56 = vadd.f32 %v3137_v52, %v1133_v34 }
 0x3a8   :  { %v1192_v21 = vadd.f32 %v1191_v19, %v1190_v46 }
 0x3a9   :  { %v3188_v61 = vmax.f32 %v1143_v56, 0.0  ;;  %v1060_v43 = vpop.permute.xlu0 %1059 }
 0x3aa   :  { %v1078_v9 = vadd.f32 %v1060_v43, %v3087_v22 }
 0x3ab   :  { %v1164_v0 = vsel %vm623_vm4, %v3188_v61, 0.0  ;;  %v1182_v47 = vmul.f32 %v3188_v61, %v3188_v61 }
 0x3ac   :  { %v1134_v10 = vadd.f32 %v1114_v62, %v1078_v9  ;;  %v1165_v6 = vadd.f32 %v1164_v0, %v1163_v4 }
 0x3ad   :  { %v1193_v7 = vsel %vm623_vm4, %v1182_v47, 0.0 }
 0x3ae   :  { %v1144_v8 = vadd.f32 %v3137_v52, %v1134_v10  ;;  %v1194_v15 = vadd.f32 %v1193_v7, %v1192_v21 }
 0x3b0   :  { %v3199_v17 = vmax.f32 %v1144_v8, 0.0  ;;  %v1096_v22 = vpop.permute.xlu1 %1095 }
 0x3b1   :  { %v1064_v18 = vpop.permute.xlu0 %1063  ;;  %v1112_v20 = vrot.slane %v1096_v22, 2 }
 0x3b2   :  { %v1166_v45 = vsel %vm623_vm4, %v3199_v17, 0.0  ;;  %v1183_v46 = vmul.f32 %v3199_v17, %v3199_v17  ;;  %v1080_v50 = vadd.f32 %v1064_v18, %v1025_v37 }
 0x3b3   :  { %v1167_v63 = vadd.f32 %v1166_v45, %v1165_v6  ;;  %v1113_v31 = vsel %vm762_vm7, %v1111_v5, %v1112_v20  ;;  %v1120_v39 = vsel %vm762_vm7, %v1112_v20, %v1105_v32 }
 0x3b4   :  { %v1195_v49 = vsel %vm623_vm4, %v1183_v46, 0.0  ;;  %v1128_v53 = vmul.f32 %v3019_v60, %v1120_v39  ;;  %v1135_v54 = vadd.f32 %v1113_v31, %v1079_v35 }
 0x3b5   :  { %v1196_v40 = vadd.f32 %v1195_v49, %v1194_v15  ;;  %v2226_v15 = vld [vmem:[#allocation11 + $0x10] sm:$0xff] }
 0x3b6   :  { %v1136_v55 = vadd.f32 %v1128_v53, %v1080_v50  ;;  %v1145_v24 = vadd.f32 %v3137_v52, %v1135_v54  ;;  %1369 = vmatpush.bf16.msra.mxu3 %v2226_v15  ;;  %v1308_v50 = vpop.permute.xlu2 %1307 }
 0x3b8   :  { %v1146_v25 = vadd.f32 %v3137_v52, %v1136_v55  ;;  %v3222_v44 = vmax.f32 %v1145_v24, 0.0  ;;  %v2271_v24 = vld [vmem:[#allocation12 + $0x1] ss:$0 sm:$0xff] }
 0x3ba   :  { %v3224_v58 = vmax.f32 %v1146_v25, 0.0  ;;  %v1168_v41 = vsel %vm623_vm4, %v3222_v44, 0.0  ;;  %v1184_v32 = vmul.f32 %v3222_v44, %v3222_v44 }
 0x3bb   :  { %v1169_v59 = vadd.f32 %v1168_v41, %v1167_v63 }
 0x3bc   :  { %v1170_v29 = vsel %vm623_vm4, %v3224_v58, 0.0  ;;  %v1185_v42 = vmul.f32 %v3224_v58, %v3224_v58  ;;  %v1197_v16 = vsel %vm623_vm4, %v1184_v32, 0.0 }
 0x3bd   :  { %v1171_v52 = vadd.f32 %v1170_v29, %v1169_v59  ;;  %v1198_v26 = vadd.f32 %v1197_v16, %v1196_v40 }
 0x3be   :  { %v1199_v34 = vsel %vm623_vm4, %v1185_v42, 0.0  ;;  %v1314_v40 = vpop.permute.xlu2 %1313 }
 0x3bf   :  { %v1172_v4 = vrot.slane %v1171_v52, 4  ;;  %v1200_v19 = vadd.f32 %v1199_v34, %v1198_v26 }
 0x3c1   :  { %v1173_v56 = vadd.f32 %v1172_v4, %v1171_v52  ;;  %v1201_v21 = vrot.slane %v1200_v19, 4 }
 0x3c3   :  { %v1174_v5 = vrot.slane %v1173_v56, 2  ;;  %v1202_v43 = vadd.f32 %v1201_v21, %v1200_v19 }
 0x3c5   :  { %v1175_v9 = vadd.f32 %v1174_v5, %v1173_v56  ;;  %v1203_v0 = vrot.slane %v1202_v43, 2 }
 0x3c7   :  { %v1176_v47 = vrot.slane %v1175_v9, 1  ;;  %v1204_v62 = vadd.f32 %v1203_v0, %v1202_v43 }
 0x3c9   :  { %v1177_v10 = vadd.f32 %v1176_v47, %v1175_v9  ;;  %v1205_v6 = vrot.slane %v1204_v62, 1 }
 0x3cb   :  { %v1206_v7 = vadd.f32 %v1205_v6, %v1204_v62  ;;  %v1207_v8 = vmul.f32 0.015625, %v1177_v10  ;;  %v1320_v10 = vpop.permute.xlu2 %1319 }
 0x3cd   :  { %v1208_v11 = vmul.f32 0.015625, %v1206_v7  ;;  %v1209_v22 = vmul.f32 %v1207_v8, %v1207_v8  ;;  %v1213_v18 = vsub.f32 %v3164_v12, %v1207_v8  ;;  %v1211_v20 = vsub.f32 %v3146_v57, %v1207_v8  ;;  %v1306_v12 = vpop.permute.xlu1 %1305 }
 0x3ce   :  { %v1212_v35 = vsub.f32 %v3151_v36, %v1207_v8  ;;  %v1215_v45 = vsub.f32 %v3188_v61, %v1207_v8  ;;  %v1216_v46 = vsub.f32 %v3199_v17, %v1207_v8  ;;  %v1214_v63 = vsub.f32 %v3178_v28, %v1207_v8  ;;  %v1310_v17 = vpop.permute.xlu0 %1309 }
 0x3cf   :  { %v1210_v37 = vsub.f32 %v1208_v11, %v1209_v22  ;;  %v1217_v31 = vsub.f32 %v3222_v44, %v1207_v8  ;;  %v1218_v39 = vsub.f32 %v3224_v58, %v1207_v8  ;;  %v2272_v44 = vld [vmem:[#allocation14 + $0x1] ss:$0 sm:$0xff] }
 0x3d1   :  { %v1219_v49 = vadd.f32 1e-05, %v1210_v37 }
 0x3d3   :  { %2283 = vrsqrt.f32 %v1219_v49  ;;  %vm1226_vm1 = vweird.f32 %v1219_v49 }
 0x3d5   :  { %v1312_v55 = vpop.permute.xlu1 %1311 }
 0x3d9   :  { %v2284_v53 = vpop.eup %2283 }
 0x3da   :  { %v1221_v57 = vmul.f32 %v2284_v53, %v1219_v49  ;;  %vm1227_vm15 = vweird.f32 %v2284_v53 }
 0x3db   :  { %vm1228_vm2 = vmor %vm1226_vm1, %vm1227_vm15 }
 0x3dc   :  { %v1222_v54 = vmul.f32 %v2284_v53, %v1221_v57 }
 0x3de   :  { %v1223_v36 = vmul.f32 0.5, %v1222_v54 }
 0x3e0   :  { %v1224_v61 = vsub.f32 1.5, %v1223_v36 }
 0x3e2   :  { %v1225_v28 = vmul.f32 %v2284_v53, %v1224_v61 }
 0x3e4   :  { %v1229_v25 = vsel %vm1228_vm2, %v2284_v53, %v1225_v28 }
 0x3e5   :  { %v1232_v58 = vmul.f32 %v1229_v25, %v1213_v18  ;;  %v1230_v41 = vmul.f32 %v1229_v25, %v1211_v20  ;;  %v1231_v32 = vmul.f32 %v1229_v25, %v1212_v35  ;;  %v1234_v59 = vmul.f32 %v1229_v25, %v1215_v45  ;;  %v1316_v20 = vpop.permute.xlu0 %1315  ;;  %v1318_v45 = vpop.permute.xlu1 %1317 }
 0x3e6   :  { %v1235_v29 = vmul.f32 %v1229_v25, %v1216_v46  ;;  %v1233_v42 = vmul.f32 %v1229_v25, %v1214_v63  ;;  %v1236_v16 = vmul.f32 %v1229_v25, %v1217_v31  ;;  %v1237_v52 = vmul.f32 %v1229_v25, %v1218_v39 }
 0x3e7   :  { %v1241_v26 = vmul.f32 %v2271_v24, %v1232_v58  ;;  %v1239_v34 = vmul.f32 %v2271_v24, %v1230_v41  ;;  %v1240_v4 = vmul.f32 %v2271_v24, %v1231_v32  ;;  %v1243_v19 = vmul.f32 %v2271_v24, %v1234_v59 }
 0x3e8   :  { %v1244_v56 = vmul.f32 %v2271_v24, %v1235_v29  ;;  %v1242_v21 = vmul.f32 %v2271_v24, %v1233_v42  ;;  %v1245_v5 = vmul.f32 %v2271_v24, %v1236_v16  ;;  %v1246_v43 = vmul.f32 %v2271_v24, %v1237_v52 }
 0x3e9   :  { %v3244_v9 = vadd.f32 %v2272_v44, %v1241_v26  ;;  %v3246_v0 = vadd.f32 %v2272_v44, %v1239_v34  ;;  %v3248_v47 = vadd.f32 %v2272_v44, %v1240_v4  ;;  %v3250_v62 = vadd.f32 %v2272_v44, %v1243_v19 }
 0x3ea   :  { %v3252_v6 = vadd.f32 %v2272_v44, %v1244_v56  ;;  %v3254_v7 = vadd.f32 %v2272_v44, %v1242_v21  ;;  %v3256_v8 = vadd.f32 %v2272_v44, %v1245_v5  ;;  %v3258_v15 = vadd.f32 %v2272_v44, %v1246_v43 }
 0x3eb   :  { %v1331_v11 = vadd.f32 %v1310_v17, %v3244_v9  ;;  %v1329_v22 = vadd.f32 %v1306_v12, %v3246_v0  ;;  %v1330_v18 = vadd.f32 %v1308_v50, %v3248_v47  ;;  %v1333_v35 = vadd.f32 %v1314_v40, %v3250_v62 }
 0x3ec   :  { %v1334_v46 = vadd.f32 %v1316_v20, %v3252_v6  ;;  %v1332_v63 = vadd.f32 %v1312_v55, %v3254_v7  ;;  %v1335_v37 = vadd.f32 %v1318_v45, %v3256_v8  ;;  %v1336_v31 = vadd.f32 %v1320_v10, %v3258_v15  ;;  %v3342_v20 = vld [vmem:[%s3643_s6 + $0x2] ss:$0 sm:$0xff]  ;;  %s2616_s6 = smov 32  }
 0x3ed   :  { %v1337_v39 = vpack.c.bf16 %v1330_v18, %v1329_v22  ;;  %v1257_v34 = vpack.c.bf16 %v3248_v47, %v3248_v47  ;;  %v1256_v4 = vpack.c.bf16 %v3246_v0, %v3246_v0  ;;  %v1258_v19 = vpack.c.bf16 %v3244_v9, %v3244_v9 }
 0x3ee   :  { %v1339_v49 = vpack.c.bf16 %v1334_v46, %v1333_v35  ;;  %v1338_v53 = vpack.c.bf16 %v1332_v63, %v1331_v11  ;;  %v1340_v57 = vpack.c.bf16 %v1336_v31, %v1335_v37 }
 0x3ef   :  { %2157 = vmatmul.msk.bf16.vlgmr.msra.gmra.mxu3 %vm623_vm4, %v1337_v39 }
 0x3ff   :  { %2158 = vmatmul.msk.bf16.gmra.mxu3 %vm623_vm4, %v1338_v53 }
 0x40f   :  { %2159 = vmatmul.msk.bf16.gmra.mxu3 %vm623_vm4, %v1339_v49 }
 0x41f   :  { %2160 = vmatmul.msk.bf16.gmra.mxu3 %vm623_vm4, %v1340_v57 }
 0x472   :  { %v1371_v50 = vpop.f32.mrf.mxu3 }
 0x473   :  { %1455 = vrot.lane.b32.xlu0 %v1371_v50, %s2612_s1  ;;  %v1391_v54 = vrot.slane %v1371_v50, 6 }
 0x47a   :  { %v1373_v12 = vpop.f32.mrf.mxu3 }
 0x47b   :  { %v1392_v36 = vrot.slane %v1373_v12, 6  ;;  %1423 = vrot.lane.b32.xlu0 %v1371_v50, %s2613_s23  ;;  %1457 = vrot.lane.b32.xlu1 %v1373_v12, %s2612_s1 }
 0x47d   :  { %v1405_v40 = vsel %vm673_vm5, %v1391_v54, %v1392_v36 }
 0x482   :  { %v1376_v61 = vpop.f32.mrf.mxu3 }
 0x483   :  { %v1393_v17 = vrot.slane %v1376_v61, 6  ;;  %1425 = vrot.lane.b32.xlu1 %v1373_v12, %s2613_s23  ;;  %1459 = vrot.lane.b32.xlu2 %v1376_v61, %s2612_s1 }
 0x485   :  { %v3281_v55 = vsel %vm673_vm5, %v1392_v36, %v1393_v17 }
 0x48a   :  { %v1378_v28 = vpop.f32.mrf.mxu3 }
 0x48b   :  { %v1394_v24 = vrot.slane %v1378_v28, 6  ;;  %1427 = vrot.lane.b32.xlu1 %v1376_v61, %s2613_s23  ;;  %1461 = vrot.lane.b32.xlu2 %v1378_v28, %s2612_s1 }
 0x48d   :  { %v3287_v25 = vsel %vm673_vm5, %v1393_v17, %v1394_v24 }
 0x492   :  { %v1381_v44 = vpop.f32.mrf.mxu3 }
 0x493   :  { %v1395_v58 = vrot.slane %v1381_v44, 6  ;;  %1429 = vrot.lane.b32.xlu2 %v1378_v28, %s2613_s23  ;;  %1431 = vrot.lane.b32.xlu1 %v1381_v44, %s2613_s23 }
 0x494   :  { %1463 = vrot.lane.b32.xlu0 %v1381_v44, %s2612_s1 }
 0x495   :  { %v3294_v41 = vsel %vm673_vm5, %v1394_v24, %v1395_v58 }
 0x49a   :  { %v1383_v32 = vpop.f32.mrf.mxu3 }
 0x49b   :  { %v1396_v59 = vrot.slane %v1383_v32, 6 }
 0x49c   :  { %1465 = vrot.lane.b32.xlu0 %v1383_v32, %s2612_s1 }
 0x49d   :  { %v3299_v29 = vsel %vm673_vm5, %v1395_v58, %v1396_v59 }
 0x4a2   :  { %v3301_v42 = vpop.f32.mrf.mxu3 }
 0x4a3   :  { %v1397_v16 = vrot.slane %v3301_v42, 6  ;;  %1467 = vrot.lane.b32.xlu2 %v3301_v42, %s2612_s1 }
 0x4a4   :  { %1433 = vrot.lane.b32.xlu0 %v1383_v32, %s2613_s23 }
 0x4a5   :  { %v3311_v52 = vsel %vm673_vm5, %v1396_v59, %v1397_v16 }
 0x4aa   :  { %v3313_v26 = vpop.f32.mrf.mxu3 }
 0x4ab   :  { %1435 = vrot.lane.b32.xlu2 %v3301_v42, %s2613_s23  ;;  %1469 = vrot.lane.b32.xlu1 %v3313_v26, %s2612_s1  ;;  %v1398_v21 = vrot.slane %v3313_v26, 6 }
 0x4ac   :  { %1437 = vrot.lane.b32.xlu0 %v3313_v26, %s2613_s23 }
 0x4ad   :  { %v1406_v43 = vsel %vm673_vm5, %v1398_v21, %v1391_v54 }
 0x4ae   :  { %v1407_v47 = vmul.f32 %v2919_v48, %v1406_v43 }
 0x4b3   :  { %1274 = vrot.lane.b32.xlu2 %v1257_v34, %s2615_s27  ;;  %1272 = vrot.lane.b32.xlu1 %v1256_v4, %s2615_s27 }
 0x4bb   :  { %1276 = vrot.lane.b32.xlu2 %v1258_v19, %s2615_s27 }
 0x4dd   :  { %v1460_v56 = vpop.permute.xlu2 %1459 }
 0x4de   :  { %v1481_v48 = vrot.slane %v1460_v56, 2 }
 0x4e5   :  { %v3331_v5 = vpop.permute.xlu0 %1455  ;;  %v1462_v0 = vpop.permute.xlu2 %1461 }
 0x4e6   :  { %v1479_v22 = vrot.slane %v3331_v5, 2  ;;  %v1482_v50 = vrot.slane %v1462_v0, 2 }
 0x4e8   :  { %v1491_v58 = vsel %vm762_vm7, %v1481_v48, %v1482_v50 }
 0x4ed   :  { %v1424_v10 = vpop.permute.xlu0 %1423  ;;  %v1458_v11 = vpop.permute.xlu1 %1457 }
 0x4ee   :  { %v1447_v9 = vadd.f32 %v1424_v10, %v1407_v47  ;;  %v1480_v18 = vrot.slane %v1458_v11, 2  ;;  %v1430_v63 = vpop.permute.xlu2 %1429 }
 0x4f0   :  { %v1493_v35 = vsel %vm762_vm7, %v1479_v22, %v1480_v18  ;;  %v1492_v39 = vsel %vm762_vm7, %v1480_v18, %v1481_v48 }
 0x4f1   :  { %v1503_v45 = vadd.f32 %v1493_v35, %v1447_v9 }
 0x4f3   :  { %v1513_v46 = vadd.f32 %v3342_v20, %v1503_v45  ;;  %v1450_v45 = vadd.f32 %v1430_v63, %v3287_v25 }
 0x4f5   :  { %v1426_v37 = vpop.permute.xlu1 %1425  ;;  %v3351_v49 = vmax.f32 %v1513_v46, 0.0 }
 0x4f6   :  { %v1448_v31 = vadd.f32 %v1426_v37, %v1405_v40 }
 0x4f7   :  { %v1552_v12 = vmul.f32 %v3351_v49, %v3351_v49  ;;  %v1531_v40 = vsel %vm623_vm4, %v3351_v49, 0.0 }
 0x4f8   :  { %v1504_v53 = vadd.f32 %v1492_v39, %v1448_v31  ;;  %v1411_v39 = vmul.f32 %v2966_v27, %v3294_v41 }
 0x4f9   :  { %v1560_v32 = vsel %vm623_vm4, %v1552_v12, 0.0 }
 0x4fa   :  { %v1514_v57 = vadd.f32 %v3342_v20, %v1504_v53 }
 0x4fc   :  { %v3356_v54 = vmax.f32 %v1514_v57, 0.0 }
 0x4fd   :  { %v1428_v36 = vpop.permute.xlu1 %1427  ;;  %v3358_v61 = vpop.permute.xlu2 %1467 }
 0x4fe   :  { %v1532_v17 = vsel %vm623_vm4, %v3356_v54, 0.0  ;;  %v1553_v28 = vmul.f32 %v3356_v54, %v3356_v54  ;;  %v1449_v24 = vadd.f32 %v1428_v36, %v3281_v55 }
 0x4ff   :  { %v1533_v44 = vadd.f32 %v1532_v17, %v1531_v40 }
 0x500   :  { %v1561_v59 = vsel %vm623_vm4, %v1553_v28, 0.0  ;;  %v1505_v34 = vadd.f32 %v1491_v58, %v1449_v24 }
 0x501   :  { %v1562_v4 = vadd.f32 %v1561_v59, %v1560_v32 }
 0x502   :  { %v1515_v19 = vadd.f32 %v3342_v20, %v1505_v34 }
 0x504   :  { %v3372_v56 = vmax.f32 %v1515_v19, 0.0 }
 0x505   :  { %v1436_v43 = vpop.permute.xlu2 %1435  ;;  %v1432_v37 = vpop.permute.xlu1 %1431 }
 0x506   :  { %v1534_v0 = vsel %vm623_vm4, %v3372_v56, 0.0  ;;  %v1554_v55 = vmul.f32 %v3372_v56, %v3372_v56  ;;  %v1464_v47 = vpop.permute.xlu0 %1463  ;;  %v1451_v36 = vadd.f32 %v1432_v37, %v1411_v39  ;;  %v1399_v37 = vsel %vm673_vm5, %v1397_v16, %v1398_v21 }
 0x507   :  { %v1535_v10 = vadd.f32 %v1534_v0, %v1533_v44  ;;  %v1483_v11 = vrot.slane %v1464_v47, 2  ;;  %v1485_v44 = vrot.slane %v3358_v61, 2 }
 0x508   :  { %v1563_v9 = vsel %vm623_vm4, %v1554_v55, 0.0 }
 0x509   :  { %v1564_v18 = vadd.f32 %v1563_v9, %v1562_v4  ;;  %v1490_v35 = vsel %vm762_vm7, %v1482_v50, %v1483_v11 }
 0x50a   :  { %v1498_v46 = vmul.f32 %v2956_v23, %v1490_v35  ;;  %v1453_v35 = vadd.f32 %v1436_v43, %v3311_v52 }
 0x50c   :  { %v1506_v48 = vadd.f32 %v1498_v46, %v1450_v45 }
 0x50d   :  { %v1275_v31 = vpop.permute.xlu2 %1274 }
 0x50e   :  { %v1516_v53 = vadd.f32 %v3342_v20, %v1506_v48  ;;  %v1466_v57 = vpop.permute.xlu0 %1465  ;;  %1298 = vst.msk [vmem:[#allocation2 + $0x4] sm:$0xf] %vm1296_vm3, %v1275_v31 }
 0x50f   :  { %v1484_v12 = vrot.slane %v1466_v57, 2 }
 0x510   :  { %v3387_v40 = vmax.f32 %v1516_v53, 0.0 }
 0x511   :  { %v1489_v25 = vsel %vm762_vm7, %v1483_v11, %v1484_v12  ;;  %v1488_v19 = vsel %vm762_vm7, %v1484_v12, %v1485_v44 }
 0x512   :  { %v1536_v23 = vsel %vm623_vm4, %v3387_v40, 0.0  ;;  %v1555_v63 = vmul.f32 %v3387_v40, %v3387_v40  ;;  %v1507_v50 = vadd.f32 %v1489_v25, %v1451_v36 }
 0x513   :  { %v1537_v27 = vadd.f32 %v1536_v23, %v1535_v10 }
 0x514   :  { %v1565_v41 = vsel %vm623_vm4, %v1555_v63, 0.0  ;;  %v1517_v17 = vadd.f32 %v3342_v20, %v1507_v50 }
 0x515   :  { %v1566_v28 = vadd.f32 %v1565_v41, %v1564_v18  ;;  %v1277_v24 = vpop.permute.xlu2 %1276 }
 0x516   :  { %v3398_v58 = vmax.f32 %v1517_v17, 0.0  ;;  %v1434_v32 = vpop.permute.xlu0 %1433  ;;  %1299 = vst.msk [vmem:[#allocation2 + $0x8] sm:$0xf] %vm1296_vm3, %v1277_v24 }
 0x517   :  { %v1452_v59 = vadd.f32 %v1434_v32, %v3299_v29 }
 0x518   :  { %v1538_v34 = vsel %vm623_vm4, %v3398_v58, 0.0  ;;  %v1556_v4 = vmul.f32 %v3398_v58, %v3398_v58 }
 0x519   :  { %v1508_v0 = vadd.f32 %v1488_v19, %v1452_v59  ;;  %v1539_v55 = vadd.f32 %v1538_v34, %v1537_v27 }
 0x51a   :  { %v1567_v61 = vsel %vm623_vm4, %v1556_v4, 0.0 }
 0x51b   :  { %v1518_v47 = vadd.f32 %v3342_v20, %v1508_v0  ;;  %v1568_v10 = vadd.f32 %v1567_v61, %v1566_v28 }
 0x51d   :  { %v3410_v11 = vmax.f32 %v1518_v47, 0.0  ;;  %v1470_v9 = vpop.permute.xlu1 %1469 }
 0x51e   :  { %v1438_v29 = vpop.permute.xlu0 %1437  ;;  %v1486_v18 = vrot.slane %v1470_v9, 2 }
 0x51f   :  { %v1540_v45 = vsel %vm623_vm4, %v3410_v11, 0.0  ;;  %v1557_v46 = vmul.f32 %v3410_v11, %v3410_v11  ;;  %v1454_v39 = vadd.f32 %v1438_v29, %v1399_v37 }
 0x520   :  { %v1541_v48 = vadd.f32 %v1540_v45, %v1539_v55  ;;  %v1487_v31 = vsel %vm762_vm7, %v1485_v44, %v1486_v18  ;;  %v1494_v52 = vsel %vm762_vm7, %v1486_v18, %v1479_v22 }
 0x521   :  { %v1569_v43 = vsel %vm623_vm4, %v1557_v46, 0.0  ;;  %v1502_v53 = vmul.f32 %v3019_v60, %v1494_v52  ;;  %v1509_v57 = vadd.f32 %v1487_v31, %v1453_v35 }
 0x522   :  { %v1570_v26 = vadd.f32 %v1569_v43, %v1568_v10 }
 0x523   :  { %v1510_v12 = vadd.f32 %v1502_v53, %v1454_v39  ;;  %v1519_v42 = vadd.f32 %v3342_v20, %v1509_v57 }
 0x525   :  { %v1520_v16 = vadd.f32 %v3342_v20, %v1510_v12  ;;  %v1527_v21 = vmax.f32 %v1519_v42, 0.0  ;;  %v1273_v36 = vpop.permute.xlu1 %1272 }
 0x526   :  { %1297 = vst.msk [vmem:[#allocation2] sm:$0xf] %vm1296_vm3, %v1273_v36 }
 0x527   :  { %v1528_v5 = vmax.f32 %v1520_v16, 0.0  ;;  %v1542_v38 = vsel %vm623_vm4, %v1527_v21, 0.0  ;;  %v1558_v22 = vmul.f32 %v1527_v21, %v1527_v21 }
 0x528   :  { %v1543_v25 = vadd.f32 %v1542_v38, %v1541_v48 }
 0x529   :  { %v1544_v23 = vsel %vm623_vm4, %v1528_v5, 0.0  ;;  %v1559_v63 = vmul.f32 %v1528_v5, %v1528_v5  ;;  %v1571_v60 = vsel %vm623_vm4, %v1558_v22, 0.0 }
 0x52a   :  { %v1545_v50 = vadd.f32 %v1544_v23, %v1543_v25  ;;  %v1572_v27 = vadd.f32 %v1571_v60, %v1570_v26 }
 0x52b   :  { %v1573_v41 = vsel %vm623_vm4, %v1559_v63, 0.0 }
 0x52c   :  { %v1546_v17 = vrot.slane %v1545_v50, 4  ;;  %v1574_v20 = vadd.f32 %v1573_v41, %v1572_v27 }
 0x52e   :  { %v1547_v28 = vadd.f32 %v1546_v17, %v1545_v50  ;;  %v1575_v24 = vrot.slane %v1574_v20, 4 }
 0x530   :  { %v1548_v44 = vrot.slane %v1547_v28, 2  ;;  %v1576_v32 = vadd.f32 %v1575_v24, %v1574_v20 }
 0x532   :  { %v1549_v59 = vadd.f32 %v1548_v44, %v1547_v28  ;;  %v1577_v34 = vrot.slane %v1576_v32, 2 }
 0x534   :  { %v1550_v4 = vrot.slane %v1549_v59, 1  ;;  %v1578_v19 = vadd.f32 %v1577_v34, %v1576_v32 }
 0x536   :  { %v1551_v0 = vadd.f32 %v1550_v4, %v1549_v59  ;;  %v1579_v55 = vrot.slane %v1578_v19, 1  ;;  %v1259_v59 = vpack.c.bf16 %v3254_v7, %v3254_v7  ;;  %v1263_v4 = vpack.c.bf16 %v3258_v15, %v3258_v15 }
 0x538   :  { %v1580_v61 = vadd.f32 %v1579_v55, %v1578_v19  ;;  %v1581_v47 = vmul.f32 0.015625, %v1551_v0  ;;  %v1260_v19 = vpack.c.bf16 %v3250_v62, %v3250_v62  ;;  %v1261_v55 = vpack.c.bf16 %v3252_v6, %v3252_v6 }
 0x53a   :  { %v1582_v10 = vmul.f32 0.015625, %v1580_v61  ;;  %v1583_v9 = vmul.f32 %v1581_v47, %v1581_v47  ;;  %v1588_v29 = vsub.f32 %v3387_v40, %v1581_v47  ;;  %v1585_v18 = vsub.f32 %v3351_v49, %v1581_v47 }
 0x53b   :  { %v1586_v35 = vsub.f32 %v3356_v54, %v1581_v47  ;;  %v1589_v45 = vsub.f32 %v3398_v58, %v1581_v47  ;;  %v1587_v46 = vsub.f32 %v3372_v56, %v1581_v47  ;;  %v1590_v48 = vsub.f32 %v3410_v11, %v1581_v47  ;;  %v2274_v54 = vld [vmem:[#allocation12 + $0x2] ss:$0 sm:$0xff]  ;;  %v2275_v56 = vld [vmem:[#allocation14 + $0x2] ss:$0 sm:$0xff] }
 0x53c   :  { %v1584_v37 = vsub.f32 %v1582_v10, %v1583_v9  ;;  %v1591_v31 = vsub.f32 %v1527_v21, %v1581_v47  ;;  %v1592_v52 = vsub.f32 %v1528_v5, %v1581_v47  ;;  %v1262_v10 = vpack.c.bf16 %v3256_v8, %v3256_v8  ;;  %v2231_v8 = vld [vmem:[#allocation15] sm:$0xff] }
 0x53e   :  { %v1593_v43 = vadd.f32 1e-05, %v1584_v37 }
 0x540   :  { %2285 = vrsqrt.f32 %v1593_v43  ;;  %vm1600_vm6 = vweird.f32 %v1593_v43 }
 0x546   :  { %v2286_v39 = vpop.eup %2285 }
 0x547   :  { %v1595_v53 = vmul.f32 %v2286_v39, %v1593_v43  ;;  %vm1601_vm5 = vweird.f32 %v2286_v39 }
 0x548   :  { %vm1602_vm7 = vmor %vm1600_vm6, %vm1601_vm5 }
 0x549   :  { %v1596_v57 = vmul.f32 %v2286_v39, %v1595_v53 }
 0x54b   :  { %v1597_v26 = vmul.f32 0.5, %v1596_v57  ;;  %v1682_v57 = vpack.c.bf16 %v2821_v2, %v2821_v2  ;;  %v1683_v2 = vpack.c.bf16 %v2836_v13, %v2836_v13 }
 0x54d   :  { %v1598_v40 = vsub.f32 1.5, %v1597_v26  ;;  %v1681_v26 = vpack.c.bf16 %v2819_v51, %v2819_v51  ;;  %v1684_v51 = vpack.c.bf16 %v2838_v14, %v2838_v14  ;;  %v1686_v14 = vpack.c.bf16 %v2813_v1, %v2813_v1 }
 0x54f   :  { %v1599_v49 = vmul.f32 %v2286_v39, %v1598_v40 }
 0x551   :  { %v1603_v58 = vsel %vm1602_vm7, %v2286_v39, %v1599_v49  ;;  %v1680_v39 = vpack.c.bf16 %v2817_v33, %v2817_v33 }
 0x552   :  { %v1607_v12 = vmul.f32 %v1603_v58, %v1588_v29  ;;  %v1604_v42 = vmul.f32 %v1603_v58, %v1585_v18  ;;  %v1605_v11 = vmul.f32 %v1603_v58, %v1586_v35  ;;  %v1608_v16 = vmul.f32 %v1603_v58, %v1589_v45  ;;  %v2234_v18 = vld [vmem:[#allocation15 + $0x18] sm:$0xff]  ;;  %v2233_v35 = vld [vmem:[#allocation15 + $0x10] sm:$0xff]  ;;  %v2232_v45 = vld [vmem:[#allocation15 + $0x8] sm:$0xff] }
 0x553   :  { %v1606_v21 = vmul.f32 %v1603_v58, %v1587_v46  ;;  %v1609_v36 = vmul.f32 %v1603_v58, %v1590_v48  ;;  %v1610_v5 = vmul.f32 %v1603_v58, %v1591_v31  ;;  %v1611_v38 = vmul.f32 %v1603_v58, %v1592_v52  ;;  %1776 = vmatpush.bf16.msrb.mxu1 %v2234_v18 }
 0x554   :  { %v1616_v22 = vmul.f32 %v2274_v54, %v1607_v12  ;;  %v1613_v25 = vmul.f32 %v2274_v54, %v1604_v42  ;;  %v1614_v23 = vmul.f32 %v2274_v54, %v1605_v11  ;;  %v1617_v20 = vmul.f32 %v2274_v54, %v1608_v16 }
 0x555   :  { %v1615_v28 = vmul.f32 %v2274_v54, %v1606_v21  ;;  %v1618_v0 = vmul.f32 %v2274_v54, %v1609_v36  ;;  %v1619_v47 = vmul.f32 %v2274_v54, %v1610_v5  ;;  %v1620_v15 = vmul.f32 %v2274_v54, %v1611_v38 }
 0x556   :  { %v1625_v63 = vadd.f32 %v2275_v56, %v1616_v22  ;;  %v1622_v60 = vadd.f32 %v2275_v56, %v1613_v25  ;;  %v1623_v50 = vadd.f32 %v2275_v56, %v1614_v23  ;;  %v1626_v24 = vadd.f32 %v2275_v56, %v1617_v20  ;;  %v2276_v22 = vld [vmem:[#allocation17] ss:$0 sm:$0xff] }
 0x557   :  { %v1624_v44 = vadd.f32 %v2275_v56, %v1615_v28  ;;  %v1627_v7 = vadd.f32 %v2275_v56, %v1618_v0  ;;  %v1628_v62 = vadd.f32 %v2275_v56, %v1619_v47  ;;  %v1629_v9 = vadd.f32 %v2275_v56, %v1620_v15  ;;  %1777 = vmatpush.bf16.msrb.mxu1 %v2233_v35 }
 0x558   :  { %v1633_v27 = vpack.c.bf16 %v1625_v63, %v1625_v63  ;;  %v1630_v41 = vpack.c.bf16 %v1622_v60, %v1622_v60  ;;  %v1631_v17 = vpack.c.bf16 %v1623_v50, %v1623_v50  ;;  %v1634_v32 = vpack.c.bf16 %v1626_v24, %v1626_v24 }
 0x559   :  { %v1632_v34 = vpack.c.bf16 %v1624_v44, %v1624_v44  ;;  %v1635_v61 = vpack.c.bf16 %v1627_v7, %v1627_v7  ;;  %v1636_v6 = vpack.c.bf16 %v1628_v62, %v1628_v62  ;;  %v1637_v29 = vpack.c.bf16 %v1629_v9, %v1629_v9 }
 0x55a   :  { %1652 = vrot.lane.b32.xlu2 %v1633_v27, %s2616_s6  ;;  %1646 = vrot.lane.b32.xlu0 %v1630_v41, %s2616_s6  ;;  %v1679_v31 = vpack.c.bf16 %v2815_v30, %v2815_v30  ;;  %v1685_v12 = vpack.c.bf16 %v2823_v3, %v2823_v3 }
 0x55b   :  { %1648 = vrot.lane.b32.xlu1 %v1631_v17, %s2616_s6  ;;  %1778 = vmatpush.bf16.msrb.mxu1 %v2232_v45 }
 0x55f   :  { %1779 = vmatpush.bf16.msrb.mxu1 %v2231_v8 }
 0x562   :  { %1654 = vrot.lane.b32.xlu2 %v1634_v32, %s2616_s6  ;;  %1278 = vrot.lane.b32.xlu0 %v1259_v59, %s2615_s27 }
 0x563   :  { %1650 = vrot.lane.b32.xlu1 %v1632_v34, %s2616_s6 }
 0x56a   :  { %1286 = vrot.lane.b32.xlu2 %v1263_v4, %s2615_s27  ;;  %1280 = vrot.lane.b32.xlu0 %v1260_v19, %s2615_s27 }
 0x56b   :  { %1282 = vrot.lane.b32.xlu1 %v1261_v55, %s2615_s27 }
 0x572   :  { %1656 = vrot.lane.b32.xlu0 %v1635_v61, %s2616_s6 }
 0x573   :  { %1284 = vrot.lane.b32.xlu1 %v1262_v10, %s2615_s27 }
 0x57a   :  { %1658 = vrot.lane.b32.xlu0 %v1636_v6, %s2616_s6 }
 0x57b   :  { %1660 = vrot.lane.b32.xlu1 %v1637_v29, %s2616_s6 }
 0x5b4   :  { %v1653_v46 = vpop.permute.xlu2 %1652 }
 0x5bc   :  { %v1655_v48 = vpop.permute.xlu2 %1654 }
 0x5c4   :  { %v1287_v37 = vpop.permute.xlu2 %1286 }
 0x5c5   :  { %1304 = vst.msk [vmem:[#allocation2 + $0x1c] sm:$0xf] %vm1296_vm3, %v1287_v37 }
 0x5cc   :  { %v1647_v52 = vpop.permute.xlu0 %1646 }
 0x5cd   :  { %1671 = vst.msk [vmem:[#allocation2] sm:$0xf] %vm1670_vm8, %v1647_v52  ;;  %v1649_v43 = vpop.permute.xlu1 %1648 }
 0x5ce   :  { %1688 = vst.msk [vmem:[#allocation2] sm:$0xf] %vm1687_vm9, %v1679_v31 }
 0x5cf   :  { %1672 = vst.msk [vmem:[#allocation2 + $0x4] sm:$0xf] %vm1670_vm8, %v1649_v43 }
 0x5d0   :  { %1689 = vst.msk [vmem:[#allocation2 + $0x4] sm:$0xf] %vm1687_vm9, %v1680_v39 }
 0x5d4   :  { %v1279_v53 = vpop.permute.xlu0 %1278 }
 0x5d5   :  { %1300 = vst.msk [vmem:[#allocation2 + $0xc] sm:$0xf] %vm1296_vm3, %v1279_v53  ;;  %v1651_v30 = vpop.permute.xlu1 %1650 }
 0x5d6   :  { %1674 = vst.msk [vmem:[#allocation2 + $0xc] sm:$0xf] %vm1670_vm8, %v1653_v46 }
 0x5d7   :  { %1691 = vst.msk [vmem:[#allocation2 + $0xc] sm:$0xf] %vm1687_vm9, %v1682_v57  ;;  %v2227_v40 = vld [vmem:[#allocation2] sm:$0xff] }
 0x5d8   :  { %1673 = vst.msk [vmem:[#allocation2 + $0x8] sm:$0xf] %vm1670_vm8, %v1651_v30  ;;  %2193 = vmatmul.msk.bf16.vlgmr.msrb.gmra.mxu1 %vm255_vm0, %v2227_v40 }
 0x5d9   :  { %1690 = vst.msk [vmem:[#allocation2 + $0x8] sm:$0xf] %vm1687_vm9, %v1681_v26 }
 0x5dc   :  { %v1281_v33 = vpop.permute.xlu0 %1280 }
 0x5dd   :  { %1301 = vst.msk [vmem:[#allocation2 + $0x10] sm:$0xf] %vm1296_vm3, %v1281_v33  ;;  %v1283_v49 = vpop.permute.xlu1 %1282 }
 0x5de   :  { %1675 = vst.msk [vmem:[#allocation2 + $0x10] sm:$0xf] %vm1670_vm8, %v1655_v48 }
 0x5df   :  { %1692 = vst.msk [vmem:[#allocation2 + $0x10] sm:$0xf] %vm1687_vm9, %v1683_v2 }
 0x5e0   :  { %1302 = vst.msk [vmem:[#allocation2 + $0x14] sm:$0xf] %vm1296_vm3, %v1283_v49  ;;  %v2228_v13 = vld [vmem:[#allocation2 + $0x8] sm:$0xff] }
 0x5e4   :  { %v1657_v54 = vpop.permute.xlu0 %1656 }
 0x5e5   :  { %1676 = vst.msk [vmem:[#allocation2 + $0x14] sm:$0xf] %vm1670_vm8, %v1657_v54  ;;  %v1285_v58 = vpop.permute.xlu1 %1284 }
 0x5e6   :  { %1693 = vst.msk [vmem:[#allocation2 + $0x14] sm:$0xf] %vm1687_vm9, %v1684_v51 }
 0x5e7   :  { %1303 = vst.msk [vmem:[#allocation2 + $0x18] sm:$0xf] %vm1296_vm3, %v1285_v58 }
 0x5e8   :  { %2194 = vmatmul.msk.bf16.gmra.mxu1 %vm255_vm0, %v2228_v13 }
 0x5ec   :  { %v1659_v56 = vpop.permute.xlu0 %1658 }
 0x5ed   :  { %1677 = vst.msk [vmem:[#allocation2 + $0x18] sm:$0xf] %vm1670_vm8, %v1659_v56  ;;  %v1661_v42 = vpop.permute.xlu1 %1660  ;;  %v2229_v11 = vld [vmem:[#allocation2 + $0x10] sm:$0xff] }
 0x5ee   :  { %1694 = vst.msk [vmem:[#allocation2 + $0x18] sm:$0xf] %vm1687_vm9, %v1685_v12 }
 0x5ef   :  { %1678 = vst.msk [vmem:[#allocation2 + $0x1c] sm:$0xf] %vm1670_vm8, %v1661_v42 }
 0x5f0   :  { %1695 = vst.msk [vmem:[#allocation2 + $0x1c] sm:$0xf] %vm1687_vm9, %v1686_v14 }
 0x5f7   :  { %v2230_v16 = vld [vmem:[#allocation2 + $0x18] sm:$0xff] }
 0x5f8   :  { %2195 = vmatmul.msk.bf16.gmra.mxu1 %vm255_vm0, %v2229_v11 }
 0x608   :  { %2196 = vmatmul.msk.bf16.gmra.mxu1 %vm255_vm0, %v2230_v16 }
 0x655   :  { %v1781_v3 = vpop.f32.mrf.mxu1 }
 0x656   :  { %v1782_v23 = vadd.f32 %v2276_v22, %v1781_v3 }
 0x658   :  { %v3510_v27 = vmax.f32 %v1782_v23, 0.0 }
 0x65a   :  { %v1832_v44 = vmul.f32 %v3510_v27, %v3510_v27  ;;  %v1811_v4 = vsel %vm255_vm0, %v3510_v27, 0.0 }
 0x65c   :  { %v1840_v10 = vsel %vm255_vm0, %v1832_v44, 0.0 }
 0x65d   :  { %v1783_v21 = vpop.f32.mrf.mxu1 }
 0x65e   :  { %v1784_v25 = vadd.f32 %v2276_v22, %v1783_v21 }
 0x660   :  { %v3508_v1 = vmax.f32 %v1784_v25, 0.0 }
 0x662   :  { %v1833_v20 = vmul.f32 %v3508_v1, %v3508_v1  ;;  %v1812_v32 = vsel %vm255_vm0, %v3508_v1, 0.0 }
 0x663   :  { %v1813_v15 = vadd.f32 %v1812_v32, %v1811_v4 }
 0x664   :  { %v1841_v19 = vsel %vm255_vm0, %v1833_v20, 0.0 }
 0x665   :  { %v1786_v36 = vpop.f32.mrf.mxu1  ;;  %v1842_v18 = vadd.f32 %v1841_v19, %v1840_v10 }
 0x666   :  { %v1787_v63 = vadd.f32 %v2276_v22, %v1786_v36 }
 0x668   :  { %v3512_v41 = vmax.f32 %v1787_v63, 0.0 }
 0x66a   :  { %v1834_v59 = vmul.f32 %v3512_v41, %v3512_v41  ;;  %v1814_v55 = vsel %vm255_vm0, %v3512_v41, 0.0 }
 0x66b   :  { %v1815_v35 = vadd.f32 %v1814_v55, %v1813_v15 }
 0x66c   :  { %v1843_v62 = vsel %vm255_vm0, %v1834_v59, 0.0  ;;  %v2238_v59 = vld [vmem:[%s3650_s13 + $0x18] sm:$0xff] }
 0x66d   :  { %v1788_v5 = vpop.f32.mrf.mxu1  ;;  %v1844_v48 = vadd.f32 %v1843_v62, %v1842_v18  ;;  %1997 = vmatpush.bf16.msra.mxu2 %v2238_v59 }
 0x66e   :  { %v1789_v50 = vadd.f32 %v2276_v22, %v1788_v5 }
 0x670   :  { %v3516_v28 = vmax.f32 %v1789_v50, 0.0 }
 0x672   :  { %v1835_v7 = vmul.f32 %v3516_v28, %v3516_v28  ;;  %v1816_v9 = vsel %vm255_vm0, %v3516_v28, 0.0 }
 0x673   :  { %v1817_v37 = vadd.f32 %v1816_v9, %v1815_v35  ;;  %v2235_v9 = vld [vmem:[%s3650_s13] sm:$0xff] }
 0x674   :  { %v1845_v45 = vsel %vm255_vm0, %v1835_v7, 0.0 }
 0x675   :  { %v1791_v38 = vpop.f32.mrf.mxu1  ;;  %v1846_v39 = vadd.f32 %v1845_v45, %v1844_v48 }
 0x676   :  { %v1792_v17 = vadd.f32 %v2276_v22, %v1791_v38 }
 0x678   :  { %v3524_v34 = vmax.f32 %v1792_v17, 0.0 }
 0x67a   :  { %v1836_v6 = vmul.f32 %v3524_v34, %v3524_v34  ;;  %v1818_v8 = vsel %vm255_vm0, %v3524_v34, 0.0 }
 0x67b   :  { %v1819_v53 = vadd.f32 %v1818_v8, %v1817_v37  ;;  %v2277_v8 = vld [vmem:[#allocation18] ss:$0 sm:$0xff] }
 0x67c   :  { %v1847_v31 = vsel %vm255_vm0, %v1836_v6, 0.0  ;;  %v2617_v6 = vmov 32.0  }
 0x67d   :  { %v1793_v60 = vpop.f32.mrf.mxu1  ;;  %v1848_v33 = vadd.f32 %v1847_v31, %v1846_v39 }
 0x67e   :  { %v1794_v24 = vadd.f32 %v2276_v22, %v1793_v60 }
 0x680   :  { %v3533_v61 = vmax.f32 %v1794_v24, 0.0 }
 0x682   :  { %v1837_v46 = vmul.f32 %v3533_v61, %v3533_v61  ;;  %v1820_v52 = vsel %vm255_vm0, %v3533_v61, 0.0 }
 0x683   :  { %v1821_v2 = vadd.f32 %v1820_v52, %v1819_v53 }
 0x684   :  { %v1849_v30 = vsel %vm255_vm0, %v1837_v46, 0.0 }
 0x685   :  { %v1796_v0 = vpop.f32.mrf.mxu1  ;;  %v1850_v54 = vadd.f32 %v1849_v30, %v1848_v33 }
 0x686   :  { %v1797_v47 = vadd.f32 %v2276_v22, %v1796_v0  ;;  %v2237_v0 = vld [vmem:[%s3650_s13 + $0x10] sm:$0xff] }
 0x687   :  { %1998 = vmatpush.bf16.msra.mxu2 %v2237_v0 }
 0x688   :  { %v3541_v29 = vmax.f32 %v1797_v47, 0.0  ;;  %v2236_v47 = vld [vmem:[%s3650_s13 + $0x8] sm:$0xff] }
 0x68a   :  { %v1838_v43 = vmul.f32 %v3541_v29, %v3541_v29  ;;  %v1822_v26 = vsel %vm255_vm0, %v3541_v29, 0.0 }
 0x68b   :  { %v1823_v58 = vadd.f32 %v1822_v26, %v1821_v2  ;;  %1999 = vmatpush.bf16.msra.mxu2 %v2236_v47 }
 0x68c   :  { %v1851_v49 = vsel %vm255_vm0, %v1838_v43, 0.0 }
 0x68d   :  { %v1798_v57 = vpop.f32.mrf.mxu1  ;;  %v1852_v56 = vadd.f32 %v1851_v49, %v1850_v54 }
 0x68e   :  { %v1799_v40 = vadd.f32 %v2276_v22, %v1798_v57  ;;  %v2278_v57 = vld [vmem:[#allocation20] ss:$0 sm:$0xff] }
 0x68f   :  { %2000 = vmatpush.bf16.msra.mxu2 %v2235_v9 }
 0x690   :  { %v1808_v51 = vmax.f32 %v1799_v40, 0.0 }
 0x692   :  { %v1824_v13 = vsel %vm255_vm0, %v1808_v51, 0.0  ;;  %v1839_v12 = vmul.f32 %v1808_v51, %v1808_v51 }
 0x693   :  { %v1825_v42 = vadd.f32 %v1824_v13, %v1823_v58 }
 0x694   :  { %v1853_v14 = vsel %vm255_vm0, %v1839_v12, 0.0 }
 0x695   :  { %v1826_v11 = vrot.slane %v1825_v42, 4  ;;  %v1854_v16 = vadd.f32 %v1853_v14, %v1852_v56 }
 0x697   :  { %v1827_v3 = vadd.f32 %v1826_v11, %v1825_v42  ;;  %v1855_v21 = vrot.slane %v1854_v16, 4 }
 0x699   :  { %v1828_v36 = vrot.slane %v1827_v3, 2  ;;  %v1856_v5 = vadd.f32 %v1855_v21, %v1854_v16 }
 0x69b   :  { %v1829_v38 = vadd.f32 %v1828_v36, %v1827_v3  ;;  %v1857_v22 = vrot.slane %v1856_v5, 2 }
 0x69d   :  { %v1830_v25 = vrot.slane %v1829_v38, 1  ;;  %v1858_v23 = vadd.f32 %v1857_v22, %v1856_v5 }
 0x69f   :  { %v1831_v63 = vadd.f32 %v1830_v25, %v1829_v38  ;;  %v1859_v60 = vrot.slane %v1858_v23, 1 }
 0x6a1   :  { %v1860_v50 = vadd.f32 %v1859_v60, %v1858_v23  ;;  %v1861_v17 = vmul.f32 0.015625, %v1831_v63 }
 0x6a3   :  { %v1862_v20 = vmul.f32 0.015625, %v1860_v50  ;;  %v1863_v24 = vmul.f32 %v1861_v17, %v1861_v17  ;;  %v1869_v15 = vsub.f32 %v3524_v34, %v1861_v17  ;;  %v1870_v18 = vsub.f32 %v3533_v61, %v1861_v17 }
 0x6a4   :  { %v1871_v35 = vsub.f32 %v3541_v29, %v1861_v17  ;;  %v1872_v45 = vsub.f32 %v1808_v51, %v1861_v17  ;;  %v1865_v46 = vsub.f32 %v3510_v27, %v1861_v17  ;;  %v1866_v34 = vsub.f32 %v3508_v1, %v1861_v17 }
 0x6a5   :  { %v1864_v44 = vsub.f32 %v1862_v20, %v1863_v24  ;;  %v1867_v37 = vsub.f32 %v3512_v41, %v1861_v17  ;;  %v1868_v31 = vsub.f32 %v3516_v28, %v1861_v17  ;;  %v2239_v28 = vld [vmem:[%s3651_s14] sm:$0xff]  ;;  %s2618_s14 = smov [#allocation21]  }
 0x6a6   :  { %2026 = vmatpush.bf16.msrb.mxu3 %v2239_v28  ;;  %s2093_s12 = sshll.u32 %s2618_s14, 4  ;;  %s2094_s12 = int_to_ptr.vmem [resolvable:$true] %s2093_s12 }
 0x6a7   :  { %v1873_v32 = vadd.f32 1e-05, %v1864_v44 }
 0x6a9   :  { %2287 = vrsqrt.f32 %v1873_v32  ;;  %vm1880_vm11 = vweird.f32 %v1873_v32 }
 0x6aa   :  { %2289 = vrcp.f32 %v2617_v6 }
 0x6af   :  { %v2288_v4 = vpop.eup %2287 }
 0x6b0   :  { %v1875_v19 = vmul.f32 %v2288_v4, %v1873_v32  ;;  %vm1881_vm10 = vweird.f32 %v2288_v4  ;;  %v2290_v49 = vpop.eup %2289 }
 0x6b1   :  { %vm1882_vm12 = vmor %vm1880_vm11, %vm1881_vm10  ;;  %v1941_v21 = vmul.f32 32.0, %v2290_v49  ;;  %vm1945_vm13 = vweird.f32 %v2290_v49 }
 0x6b2   :  { %v1876_v55 = vmul.f32 %v2288_v4, %v1875_v19 }
 0x6b3   :  { %v1942_v20 = vsub.f32 1.0, %v1941_v21 }
 0x6b4   :  { %v1877_v7 = vmul.f32 0.5, %v1876_v55 }
 0x6b5   :  { %v1943_v19 = vmul.f32 %v2290_v49, %v1942_v20  ;;  %v2068_v20 = vld [vmem:[#allocation3 + $0x18] sm:$0xff] }
 0x6b6   :  { %v1878_v10 = vsub.f32 1.5, %v1877_v7 }
 0x6b8   :  { %v1879_v62 = vmul.f32 %v2288_v4, %v1878_v10  ;;  %v1944_v10 = vadd.f32 %v2290_v49, %v1943_v19 }
 0x6ba   :  { %v1883_v48 = vsel %vm1882_vm12, %v2288_v4, %v1879_v62 }
 0x6bb   :  { %v1888_v52 = vmul.f32 %v1883_v48, %v1869_v15  ;;  %v1889_v43 = vmul.f32 %v1883_v48, %v1870_v18  ;;  %v1890_v39 = vmul.f32 %v1883_v48, %v1871_v35  ;;  %v1891_v53 = vmul.f32 %v1883_v48, %v1872_v45 }
 0x6bc   :  { %v1884_v61 = vmul.f32 %v1883_v48, %v1865_v46  ;;  %v1885_v29 = vmul.f32 %v1883_v48, %v1866_v34  ;;  %v1886_v30 = vmul.f32 %v1883_v48, %v1867_v37  ;;  %v1887_v26 = vmul.f32 %v1883_v48, %v1868_v31 }
 0x6bd   :  { %v1899_v40 = vmul.f32 %v2277_v8, %v1888_v52  ;;  %v1900_v33 = vmul.f32 %v2277_v8, %v1889_v43  ;;  %v1901_v27 = vmul.f32 %v2277_v8, %v1890_v39  ;;  %v1902_v2 = vmul.f32 %v2277_v8, %v1891_v53 }
 0x6be   :  { %v1895_v1 = vmul.f32 %v2277_v8, %v1884_v61  ;;  %v1896_v51 = vmul.f32 %v2277_v8, %v1885_v29  ;;  %v1897_v41 = vmul.f32 %v2277_v8, %v1886_v30  ;;  %v1898_v54 = vmul.f32 %v2277_v8, %v1887_v26 }
 0x6bf   :  { %v3581_v58 = vadd.f32 %v2278_v57, %v1899_v40  ;;  %v3583_v13 = vadd.f32 %v2278_v57, %v1900_v33  ;;  %v3585_v12 = vadd.f32 %v2278_v57, %v1901_v27  ;;  %v3593_v11 = vadd.f32 %v2278_v57, %v1902_v2 }
 0x6c0   :  { %v3587_v56 = vadd.f32 %v2278_v57, %v1895_v1  ;;  %v3589_v42 = vadd.f32 %v2278_v57, %v1896_v51  ;;  %v3591_v14 = vadd.f32 %v2278_v57, %v1897_v41  ;;  %v3599_v5 = vadd.f32 %v2278_v57, %v1898_v54 }
 0x6c1   :  { %v1927_v16 = vsel %vm255_vm0, %v3581_v58, 0.0  ;;  %v1928_v3 = vsel %vm255_vm0, %v3583_v13, 0.0  ;;  %v1930_v25 = vsel %vm255_vm0, %v3585_v12, 0.0  ;;  %v1932_v50 = vsel %vm255_vm0, %v3593_v11, 0.0 }
 0x6c2   :  { %v1929_v36 = vadd.f32 %v1928_v3, %v1927_v16  ;;  %v1914_v38 = vsel %vm255_vm0, %v3587_v56, 0.0  ;;  %v1915_v22 = vsel %vm255_vm0, %v3589_v42, 0.0  ;;  %v1917_v60 = vsel %vm255_vm0, %v3591_v14, 0.0 }
 0x6c3   :  { %v1916_v23 = vadd.f32 %v1915_v22, %v1914_v38  ;;  %v1919_v44 = vsel %vm255_vm0, %v3599_v5, 0.0  ;;  %v1946_v18 = vsel %vm1945_vm13, %v2290_v49, %v1944_v10 }
 0x6c4   :  { %v1931_v63 = vadd.f32 %v1930_v25, %v1929_v36 }
 0x6c5   :  { %v1918_v17 = vadd.f32 %v1917_v60, %v1916_v23  ;;  %v2066_v60 = vld [vmem:[#allocation3 + $0x8] sm:$0xff] }
 0x6c6   :  { %v1933_v24 = vadd.f32 %v1932_v50, %v1931_v63  ;;  %v2065_v63 = vld [vmem:[#allocation3] sm:$0xff]  ;;  %v2067_v50 = vld [vmem:[#allocation3 + $0x10] sm:$0xff] }
 0x6c7   :  { %v1920_v32 = vadd.f32 %v1919_v44, %v1918_v17 }
 0x6c8   :  { %v1934_v59 = vrot.slane %v1933_v24, 4 }
 0x6c9   :  { %v1921_v4 = vrot.slane %v1920_v32, 4 }
 0x6ca   :  { %v1935_v0 = vadd.f32 %v1934_v59, %v1933_v24 }
 0x6cb   :  { %v1922_v55 = vadd.f32 %v1921_v4, %v1920_v32  ;;  %v2069_v32 = vld [vmem:[#allocation3 + $0x20] sm:$0xff]  ;;  %v2070_v4 = vld [vmem:[#allocation3 + $0x28] sm:$0xff] }
 0x6cc   :  { %v1936_v7 = vrot.slane %v1935_v0, 2 }
 0x6cd   :  { %v1923_v47 = vrot.slane %v1922_v55, 2 }
 0x6ce   :  { %v1937_v15 = vadd.f32 %v1936_v7, %v1935_v0  ;;  %v2072_v7 = vld [vmem:[#allocation3 + $0x38] sm:$0xff] }
 0x6cf   :  { %v1924_v62 = vadd.f32 %v1923_v47, %v1922_v55 }
 0x6d0   :  { %v1938_v9 = vrot.slane %v1937_v15, 1 }
 0x6d1   :  { %v1925_v6 = vrot.slane %v1924_v62, 1 }
 0x6d2   :  { %v1939_v35 = vadd.f32 %v1938_v9, %v1937_v15 }
 0x6d3   :  { %v1926_v45 = vadd.f32 %v1925_v6, %v1924_v62 }
 0x6d4   :  { %v1948_v8 = vmul.f32 %v1946_v18, %v1939_v35 }
 0x6d5   :  { %v1947_v46 = vmul.f32 %v1946_v18, %v1926_v45 }
 0x6d6   :  { %v1950_v48 = vpack.c.bf16 %v1948_v8, %v1948_v8 }
 0x6d7   :  { %v1949_v34 = vpack.c.bf16 %v1947_v46, %v1947_v46 }
 0x6d8   :  { %v1962_v37 = vunpack.c.l.b16 %v1950_v48 }
 0x6d9   :  { %v1961_v31 = vunpack.c.l.b16 %v1949_v34 }
 0x6db   :  { %v1964_v52 = vsel %vm1963_vm14, %v1962_v37, %v1961_v31 }
 0x6dc   :  { %v1965_v43 = vpack.c.b16 %v1964_v52, %v1964_v52 }
 0x6de   :  { %2213 = vmatmul.msk.bf16.vlgmr.msra.gmra.mxu2 %vm255_vm0, %v1965_v43 }
 0x761   :  { %v2002_v39 = vpop.f32.mrf.mxu2 }
 0x762   :  { %v2006_v53 = vmax.f32 %v2002_v39, 0.0 }
 0x764   :  { %v2007_v57 = vpack.c.bf16 %v2006_v53, %v2006_v53 }
 0x766   :  { %2218 = vmatmul.msk.bf16.vlgmr.msrb.gmra.mxu3 %vm623_vm4, %v2007_v57 }
 0x769   :  { %v2004_v61 = vpop.f32.mrf.mxu2 }
 0x7e9   :  { %v2028_v29 = vpop.f32.mrf.mxu3 }
 0x7ea   :  { %v2219_v30 = vmul.f32 -1.442695, %v2028_v29 }
 0x7ec   :  { %2291 = vpow2.f32 %v2219_v30 }
 0x7f1   :  { %v2030_v26 = vpop.f32.mrf.mxu3 }
 0x7f2   :  { %v2292_v40 = vpop.eup %2291 }
 0x7f3   :  { %v2035_v33 = vadd.f32 1.0, %v2292_v40 }
 0x7f5   :  { %2293 = vrcp.f32 %v2035_v33  ;;  %v2047_v1 = vand.u32 2147483648, %v2035_v33  ;;  %v2045_v41 = vand.u32 2147483647, %v2035_v33  ;;  %vm2041_vm1 = vweird.f32 %v2035_v33 }
 0x7f7   :  { %v2048_v28 = vor.u32 1.1754944e-38, %v2047_v1  ;;  %vm2046_vm4 = vcmp.eq.f32.partialorder %v2045_v41, 8.507059e+37 }
 0x7fb   :  { %v2294_v27 = vpop.eup %2293 }
 0x7fc   :  { %v2037_v2 = vmul.f32 %v2294_v27, %v2035_v33  ;;  %vm2042_vm15 = vweird.f32 %v2294_v27 }
 0x7fd   :  { %vm2043_vm2 = vmor %vm2041_vm1, %vm2042_vm15 }
 0x7fe   :  { %v2038_v49 = vsub.f32 1.0, %v2037_v2 }
 0x800   :  { %v2039_v51 = vmul.f32 %v2294_v27, %v2038_v49 }
 0x802   :  { %v2040_v54 = vadd.f32 %v2294_v27, %v2039_v51 }
 0x804   :  { %v2044_v16 = vsel %vm2043_vm2, %v2294_v27, %v2040_v54 }
 0x805   :  { %v2049_v3 = vsel %vm2046_vm4, %v2048_v28, %v2044_v16 }
 0x806   :  { %v2052_v21 = vrot.slane %v2049_v3, 1  ;;  %v2053_v36 = vperm.slane %v2049_v3, 0 }
 0x808   :  { %v2054_v38 = vperm.slane %v2052_v21, 0  ;;  %v2057_v22 = vmul.f32 %v2053_v36, %v3587_v56  ;;  %v2058_v25 = vmul.f32 %v2053_v36, %v3589_v42  ;;  %v2059_v23 = vmul.f32 %v2053_v36, %v3591_v14  ;;  %v2071_v14 = vld [vmem:[#allocation3 + $0x30] sm:$0xff] }
 0x809   :  { %v2060_v17 = vmul.f32 %v2053_v36, %v3599_v5 }
 0x80a   :  { %v2061_v24 = vmul.f32 %v2054_v38, %v3581_v58  ;;  %v2062_v44 = vmul.f32 %v2054_v38, %v3583_v13  ;;  %v2063_v59 = vmul.f32 %v2054_v38, %v3585_v12  ;;  %v2073_v19 = vadd.f32 %v2065_v63, %v2057_v22 }
 0x80b   :  { %v2074_v56 = vadd.f32 %v2066_v60, %v2058_v25  ;;  %v2075_v0 = vadd.f32 %v2067_v50, %v2059_v23  ;;  %v2064_v42 = vmul.f32 %v2054_v38, %v3593_v11  ;;  %v2076_v55 = vadd.f32 %v2068_v20, %v2060_v17 }
 0x80c   :  { %v2077_v47 = vadd.f32 %v2069_v32, %v2061_v24  ;;  %2081 = vst.msk [vmem:[#allocation21] sm:$0xff] %vm255_vm0, %v2073_v19  ;;  %v2078_v5 = vadd.f32 %v2070_v4, %v2062_v44  ;;  %v2079_v58 = vadd.f32 %v2071_v14, %v2063_v59 }
 0x80d   :  { %2082 = vst.msk [vmem:[#allocation21 + $0x8] sm:$0xff] %vm255_vm0, %v2074_v56  ;;  %v2080_v13 = vadd.f32 %v2072_v7, %v2064_v42 }
 0x80e   :  { %2083 = vst.msk [vmem:[#allocation21 + $0x10] sm:$0xff] %vm255_vm0, %v2075_v0 }
 0x80f   :  { %2084 = vst.msk [vmem:[#allocation21 + $0x18] sm:$0xff] %vm255_vm0, %v2076_v55 }
 0x810   :  { %2085 = vst.msk [vmem:[#allocation21 + $0x20] sm:$0xff] %vm255_vm0, %v2077_v47 }
 0x811   :  { %2086 = vst.msk [vmem:[#allocation21 + $0x28] sm:$0xff] %vm255_vm0, %v2078_v5 }
 0x812   :  { %2087 = vst.msk [vmem:[#allocation21 + $0x30] sm:$0xff] %vm255_vm0, %v2079_v58 }
 0x813   :  { %2088 = vst.msk [vmem:[#allocation21 + $0x38] sm:$0xff] %vm255_vm0, %v2080_v13 }
 0x814   :  { %2101 = dma.vmem_to_hbm [thread:$0]  %s2094_s12, 1024, %s2096_s4, [#allocation5], %s2605_s11, %s2605_s11, %s2606_s2  }
 0x815   :  { %2595 = dma.done.wait [#allocation5], 1024  }
 0x816   :  { %2596 = vsyncadd [#allocation5], 4294966272 }
 0x817   :  { %2106 = vsyncpa [#allocation4], 1 }
 0x818   :  { %2107 = vsyncpa [#allocation7], 1 }
 0x819   :  { %2108 = vsyncpa [#allocation10], 1 }
 0x81a   :  { %2109 = vsyncpa [#allocation13], 1 }
 0x81b   :  { %2110 = vsyncpa [#allocation16], 1 }
 0x81c   :  { %2111 = vsyncpa [#allocation19], 1 }
 0x81d   :  { %2112 = vsyncpa [#allocation5], 1 }

</bundles_post_ra>
